<compile_context>
chip_gen: v7x
topology: tpu7x:2x2x1
jax: 0.10.0
libtpu: 0.0.40
codegen_flags: <defaults>
</compile_context>

<pallas_src>
import jax
import jax.numpy as jnp
from jax.experimental import pallas as pl
from jax.experimental.pallas import tpu as pltpu

# ---------------- model hyperparameters (small, lane-aligned) ------------------
VOC_SIZE = 128     # voc.size
EMBED_SIZE = 128   # embed_size
HIDDEN_SIZE = 128  # hidden_size (scaled down from 512, lane-aligned)
NUM_LAYERS = 3
BATCH = 8
SEQ_LEN = 8


# ---------------- fused multi-step Pallas kernel --------------------------------
def _generator_seq_kernel(tok_ref, embed_ref, h0_ref, c0_ref,
                          wih_ref, whh_ref, b_ref, wlin_ref, blin_ref,
                          logits_ref, h_out_ref, c_out_ref):
    """One grid step == one decode step of the Generator (teacher-forced token).

    tok:   [1, B, 1] int32 (this step's tokens)   embed: [V, E]      bf16
    h0,c0: [L, B, H] f32 (initial state)          w_ih:  [L, E, 4H]  bf16
    w_hh:  [L, H, 4H] bf16                        b:     [L, 1, 4H]  f32 (b_ih+b_hh)
    wlin:  [H, V] bf16                            blin:  [1, V]      f32
    logits_ref: [1, B, V] f32 (this step)
    h_out/c_out: [L, B, H] f32 -- VMEM-resident carry across the whole grid.
    Gate order: i, f, g, o (PyTorch).
    """
    t = pl.program_id(0)
    B = tok_ref.shape[1]
    V = embed_ref.shape[0]
    H = h0_ref.shape[-1]

    # Load the initial recurrent state into the resident output buffers once.
    @pl.when(t == 0)
    def _():
        h_out_ref[...] = h0_ref[...]
        c_out_ref[...] = c0_ref[...]

    # Embedding lookup as a one-hot MXU matmul (exact: rows picked by 1.0s).
    # NOTE: out-of-range token ids silently give an all-zero embedding row
    # (torch.nn.Embedding would raise) -- acceptable for valid vocab ids.
    tok = tok_ref[0]                                                # [B, 1] int32
    col = jax.lax.broadcasted_iota(jnp.int32, (B, V), dimension=1)
    onehot = (col == tok).astype(jnp.bfloat16)                      # [B, V] bf16
    x = jnp.dot(onehot, embed_ref[...],
                preferred_element_type=jnp.float32)                 # [B, E] f32

    # 3 stacked LSTM layers; weights resident in VMEM, two K=128 dots per layer.
    for layer in range(NUM_LAYERS):
        h_prev = h_out_ref[layer]                                   # [B, H] f32
        c_prev = c_out_ref[layer]                                   # [B, H] f32
        gates = (jnp.dot(x.astype(jnp.bfloat16), wih_ref[layer],
                         preferred_element_type=jnp.float32)
                 + jnp.dot(h_prev.astype(jnp.bfloat16), whh_ref[layer],
                           preferred_element_type=jnp.float32)
                 + b_ref[layer])                                    # [B, 4H] f32
        i_g = jax.nn.sigmoid(gates[:, 0 * H:1 * H])
        f_g = jax.nn.sigmoid(gates[:, 1 * H:2 * H])
        g_g = jnp.tanh(gates[:, 2 * H:3 * H])
        o_g = jax.nn.sigmoid(gates[:, 3 * H:4 * H])
        c_new = f_g * c_prev + i_g * g_g
        h_new = o_g * jnp.tanh(c_new)
        h_out_ref[layer] = h_new
        c_out_ref[layer] = c_new
        x = h_new

    # Output projection for this step (lane-dense [B, V] store).
    logits_ref[0] = (jnp.dot(x.astype(jnp.bfloat16), wlin_ref[...],
                             preferred_element_type=jnp.float32)
                     + blin_ref[...])


@jax.jit
def generator_forward_seq(params, tokens_seq, h, c):
    """tokens_seq: [T, B] int32 (teacher-forced tokens, as in `likelihood`).

    Returns (logits [T, B, V] f32, (h_out, c_out)) — T consecutive applications
    of the PyTorch forward(input, h) with weights/state kept on-chip.
    """
    T, B = tokens_seq.shape
    L, _, H = h.shape
    V, E = params["embed"].shape
    tok3d = tokens_seq.reshape(T, B, 1).astype(jnp.int32)

    # Advisory cost estimate for the XLA scheduler.
    flops = T * (2 * B * V * E
                 + NUM_LAYERS * (2 * B * E * 4 * H + 2 * B * H * 4 * H)
                 + 2 * B * H * V)
    transcendentals = T * NUM_LAYERS * 5 * B * H
    weight_bytes = (params["embed"].size * 2 + params["w_ih"].size * 2
                    + params["w_hh"].size * 2 + params["b"].size * 4
                    + params["w_lin"].size * 2 + params["b_lin"].size * 4)
    bytes_accessed = int(weight_bytes + T * B * 4 + T * B * V * 4
                         + 4 * L * B * H * 4)

    const3 = lambda t: (0, 0, 0)
    const2 = lambda t: (0, 0)

    logits, h_out, c_out = pl.pallas_call(
        _generator_seq_kernel,
        out_shape=(jax.ShapeDtypeStruct((T, B, V), jnp.float32),
                   jax.ShapeDtypeStruct((L, B, H), jnp.float32),
                   jax.ShapeDtypeStruct((L, B, H), jnp.float32)),
        grid=(T,),
        in_specs=[
            pl.BlockSpec((1, B, 1), lambda t: (t, 0, 0)),        # tokens (per step)
            pl.BlockSpec((V, E), const2),                        # embed (resident)
            pl.BlockSpec((L, B, H), const3),                     # h0
            pl.BlockSpec((L, B, H), const3),                     # c0
            pl.BlockSpec((L, E, 4 * H), const3),                 # w_ih (resident)
            pl.BlockSpec((L, H, 4 * H), const3),                 # w_hh (resident)
            pl.BlockSpec((L, 1, 4 * H), const3),                 # bias
            pl.BlockSpec((H, V), const2),                        # w_lin (resident)
            pl.BlockSpec((1, V), const2),                        # b_lin
        ],
        out_specs=(pl.BlockSpec((1, B, V), lambda t: (t, 0, 0)),  # logits per step
                   pl.BlockSpec((L, B, H), const3),               # h carry/out
                   pl.BlockSpec((L, B, H), const3)),              # c carry/out
        compiler_params=pltpu.CompilerParams(
            dimension_semantics=("arbitrary",)),                  # sequential carry
        cost_estimate=pl.CostEstimate(flops=int(flops),
                                      transcendentals=int(transcendentals),
                                      bytes_accessed=bytes_accessed),
    )(tok3d, params["embed"], h, c, params["w_ih"], params["w_hh"], params["b"],
      params["w_lin"], params["b_lin"])
    return logits, (h_out, c_out)


def generator_forward(params, tokens, h, c):
    """Single decode step == PyTorch Generator.forward(input, h). tokens: [B]."""
    logits, state = generator_forward_seq(params, tokens[None, :], h, c)
    return logits[0], state


# ---------------- parameter init (deterministic, synthetic) --------------------
def init_params(key):
    params = {}
    k_embed, k_rest = jax.random.split(key)
    params["embed"] = jax.random.uniform(
        k_embed, (VOC_SIZE, EMBED_SIZE), jnp.float32, -0.1, 0.1
    ).astype(jnp.bfloat16)

    wih_layers, whh_layers, b_layers = [], [], []
    for layer in range(NUM_LAYERS):
        in_sz = EMBED_SIZE if layer == 0 else HIDDEN_SIZE
        k_rest, k1, k2, k3, k4 = jax.random.split(k_rest, 5)
        # pre-transposed: [in, 4H] / [H, 4H]; gate order i, f, g, o
        wih = jax.random.uniform(k1, (in_sz, 4 * HIDDEN_SIZE), jnp.float32, -0.1, 0.1)
        whh = jax.random.uniform(k2, (HIDDEN_SIZE, 4 * HIDDEN_SIZE), jnp.float32, -0.1, 0.1)
        b_ih = jax.random.uniform(k3, (1, 4 * HIDDEN_SIZE), jnp.float32, -0.1, 0.1)
        b_hh = jax.random.uniform(k4, (1, 4 * HIDDEN_SIZE), jnp.float32, -0.1, 0.1)
        wih_layers.append(wih)
        whh_layers.append(whh)
        b_layers.append(b_ih + b_hh)
    params["w_ih"] = jnp.stack(wih_layers).astype(jnp.bfloat16)   # [L, E, 4H]
    params["w_hh"] = jnp.stack(whh_layers).astype(jnp.bfloat16)   # [L, H, 4H]
    params["b"] = jnp.stack(b_layers)                              # [L, 1, 4H] f32

    k_rest, k5, k6 = jax.random.split(k_rest, 3)
    params["w_lin"] = jax.random.uniform(
        k5, (HIDDEN_SIZE, VOC_SIZE), jnp.float32, -0.1, 0.1).astype(jnp.bfloat16)
    params["b_lin"] = jax.random.uniform(k6, (1, VOC_SIZE), jnp.float32, -0.1, 0.1)
    return params


# ---------------- pure-JAX reference (same numerics as the kernel) --------------
def reference_forward_step(params, tokens, h, c):
    x = params["embed"][tokens].astype(jnp.float32)                # [B, E]
    H = HIDDEN_SIZE
    h_outs, c_outs = [], []
    for layer in range(NUM_LAYERS):
        gates = (jnp.dot(x.astype(jnp.bfloat16), params["w_ih"][layer],
                         preferred_element_type=jnp.float32)
                 + jnp.dot(h[layer].astype(jnp.bfloat16), params["w_hh"][layer],
                           preferred_element_type=jnp.float32)
                 + params["b"][layer])
        i_g = jax.nn.sigmoid(gates[:, 0 * H:1 * H])
        f_g = jax.nn.sigmoid(gates[:, 1 * H:2 * H])
        g_g = jnp.tanh(gates[:, 2 * H:3 * H])
        o_g = jax.nn.sigmoid(gates[:, 3 * H:4 * H])
        c_new = f_g * c[layer] + i_g * g_g
        h_new = o_g * jnp.tanh(c_new)
        h_outs.append(h_new)
        c_outs.append(c_new)
        x = h_new
    logits = (jnp.dot(x.astype(jnp.bfloat16), params["w_lin"],
                      preferred_element_type=jnp.float32) + params["b_lin"])
    return logits, (jnp.stack(h_outs), jnp.stack(c_outs))


def reference_forward_seq(params, tokens_seq, h, c):
    logits_list = []
    for t in range(tokens_seq.shape[0]):
        logits, (h, c) = reference_forward_step(params, tokens_seq[t], h, c)
        logits_list.append(logits)
    return jnp.stack(logits_list), (h, c)


if __name__ == "__main__":
    key = jax.random.PRNGKey(0)
    k_params, k_tok, k_h, k_c = jax.random.split(key, 4)

    params = init_params(k_params)
    tokens_seq = jax.random.randint(k_tok, (SEQ_LEN, BATCH), 0, VOC_SIZE,
                                    dtype=jnp.int32)
    # init_h uses torch.rand -> uniform [0, 1)
    h0 = jax.random.uniform(k_h, (NUM_LAYERS, BATCH, HIDDEN_SIZE), jnp.float32)
    c0 = jax.random.uniform(k_c, (NUM_LAYERS, BATCH, HIDDEN_SIZE), jnp.float32)

    # Multi-step fused decode (weights + state resident across all T steps).
    logits_seq, (h_out, c_out) = generator_forward_seq(params, tokens_seq, h0, c0)
    jax.block_until_ready((logits_seq, h_out, c_out))

    assert logits_seq.shape == (SEQ_LEN, BATCH, VOC_SIZE)
    assert h_out.shape == (NUM_LAYERS, BATCH, HIDDEN_SIZE)
    assert c_out.shape == (NUM_LAYERS, BATCH, HIDDEN_SIZE)

    # numerical sanity check against a pure-JAX reference with identical numerics
    ref_logits, (ref_h, ref_c) = reference_forward_seq(params, tokens_seq, h0, c0)
    assert jnp.allclose(logits_seq, ref_logits, atol=1e-2, rtol=1e-2)
    assert jnp.allclose(h_out, ref_h, atol=1e-2, rtol=1e-2)
    assert jnp.allclose(c_out, ref_c, atol=1e-2, rtol=1e-2)

    # single-step path (== PyTorch forward(input, h) for one time step)
    logits1, (h1, c1) = generator_forward(params, tokens_seq[0], h0, c0)
    jax.block_until_ready((logits1, h1, c1))
    ref_l1, (ref_h1, ref_c1) = reference_forward_step(params, tokens_seq[0], h0, c0)
    assert jnp.allclose(logits1, ref_l1, atol=1e-2, rtol=1e-2)
    assert jnp.allclose(h1, ref_h1, atol=1e-2, rtol=1e-2)
    assert jnp.allclose(c1, ref_c1, atol=1e-2, rtol=1e-2)

    # TODO(synk): in-kernel multinomial sampling (torch.multinomial in sample/
    # evolve) is not implemented; tokens are teacher-forced as in `likelihood`.
    print("KERNEL_OK")
</pallas_src>

<mosaic_0001>
module attributes {stable_mosaic.version = 11 : i64} {
  func.func @_generator_seq_kernel(%arg0: i32, %arg1: memref<1x8x1xi32, #tpu.memory_space<vmem>>, %arg2: memref<128x128xbf16, #tpu.memory_space<vmem>>, %arg3: memref<3x8x128xf32, #tpu.memory_space<vmem>>, %arg4: memref<3x8x128xf32, #tpu.memory_space<vmem>>, %arg5: memref<3x128x512xbf16, #tpu.memory_space<vmem>>, %arg6: memref<3x128x512xbf16, #tpu.memory_space<vmem>>, %arg7: memref<3x1x512xf32, #tpu.memory_space<vmem>>, %arg8: memref<128x128xbf16, #tpu.memory_space<vmem>>, %arg9: memref<1x128xf32, #tpu.memory_space<vmem>>, %arg10: memref<1x8x128xf32, #tpu.memory_space<vmem>>, %arg11: memref<3x8x128xf32, #tpu.memory_space<vmem>>, %arg12: memref<3x8x128xf32, #tpu.memory_space<vmem>>) attributes {dimension_semantics = [#tpu.dimension_semantics<arbitrary>], iteration_bounds = array<i64: 8>, scalar_prefetch = 0 : i64, scratch_operands = 0 : i64, tpu.core_type = #tpu.core_type<tc>, window_params = [{transform_indices = @transform_0, window_bounds = array<i64: 1, 8, 1>}, {pipeline_mode = #tpu.pipeline_mode<synchronous>, transform_indices = @transform_1, window_bounds = array<i64: 128, 128>}, {pipeline_mode = #tpu.pipeline_mode<synchronous>, transform_indices = @transform_2, window_bounds = array<i64: 3, 8, 128>}, {pipeline_mode = #tpu.pipeline_mode<synchronous>, transform_indices = @transform_3, window_bounds = array<i64: 3, 8, 128>}, {pipeline_mode = #tpu.pipeline_mode<synchronous>, transform_indices = @transform_4, window_bounds = array<i64: 3, 128, 512>}, {pipeline_mode = #tpu.pipeline_mode<synchronous>, transform_indices = @transform_5, window_bounds = array<i64: 3, 128, 512>}, {pipeline_mode = #tpu.pipeline_mode<synchronous>, transform_indices = @transform_6, window_bounds = array<i64: 3, 1, 512>}, {pipeline_mode = #tpu.pipeline_mode<synchronous>, transform_indices = @transform_7, window_bounds = array<i64: 128, 128>}, {pipeline_mode = #tpu.pipeline_mode<synchronous>, transform_indices = @transform_8, window_bounds = array<i64: 1, 128>}, {transform_indices = @transform_9, window_bounds = array<i64: 1, 8, 128>}, {pipeline_mode = #tpu.pipeline_mode<synchronous>, transform_indices = @transform_10, window_bounds = array<i64: 3, 8, 128>}, {pipeline_mode = #tpu.pipeline_mode<synchronous>, transform_indices = @transform_11, window_bounds = array<i64: 3, 8, 128>}]} {
    %c0_i32 = arith.constant 0 : i32
    %0 = arith.cmpi eq, %arg0, %c0_i32 : i32
    %1 = arith.extui %0 : i1 to i32
    %c0_i32_0 = arith.constant 0 : i32
    %2 = arith.cmpi ne, %1, %c0_i32_0 : i32
    scf.if %2 {
      %c0_89 = arith.constant 0 : index
      %c0_90 = arith.constant 0 : index
      %c0_91 = arith.constant 0 : index
      %166 = vector.load %arg3[%c0_89, %c0_90, %c0_91] : memref<3x8x128xf32, #tpu.memory_space<vmem>>, vector<3x8x128xf32>
      %c0_92 = arith.constant 0 : index
      %c0_93 = arith.constant 0 : index
      %c0_94 = arith.constant 0 : index
      %167 = vector.load %arg11[%c0_92, %c0_93, %c0_94] : memref<3x8x128xf32, #tpu.memory_space<vmem>>, vector<3x8x128xf32>
      tpu.vector_store %arg11[%c0_92, %c0_93, %c0_94], %166 {strides = array<i32>} : memref<3x8x128xf32, #tpu.memory_space<vmem>>, vector<3x8x128xf32>,
      %c0_95 = arith.constant 0 : index
      %c0_96 = arith.constant 0 : index
      %c0_97 = arith.constant 0 : index
      %168 = vector.load %arg4[%c0_95, %c0_96, %c0_97] : memref<3x8x128xf32, #tpu.memory_space<vmem>>, vector<3x8x128xf32>
      %c0_98 = arith.constant 0 : index
      %c0_99 = arith.constant 0 : index
      %c0_100 = arith.constant 0 : index
      %169 = vector.load %arg12[%c0_98, %c0_99, %c0_100] : memref<3x8x128xf32, #tpu.memory_space<vmem>>, vector<3x8x128xf32>
      tpu.vector_store %arg12[%c0_98, %c0_99, %c0_100], %168 {strides = array<i32>} : memref<3x8x128xf32, #tpu.memory_space<vmem>>, vector<3x8x128xf32>,
    } else {
    }
    %c0 = arith.constant 0 : index
    %c0_1 = arith.constant 0 : index
    %c0_2 = arith.constant 0 : index
    %3 = vector.load %arg1[%c0, %c0_1, %c0_2] : memref<1x8x1xi32, #tpu.memory_space<vmem>>, vector<1x8x1xi32>
    %4 = vector.shape_cast %3 : vector<1x8x1xi32> to vector<8x1xi32>
    %5 = tpu.iota {dimensions = array<i32: 1>} : vector<8x128xi32>
    %6 = vector.broadcast %4 : vector<8x1xi32> to vector<8x128xi32>
    %7 = arith.cmpi eq, %5, %6 : vector<8x128xi32>
    %8 = arith.extui %7 : vector<8x128xi1> to vector<8x128xi32>
    %9 = arith.sitofp %8 : vector<8x128xi32> to vector<8x128xf32>
    %10 = arith.truncf %9 : vector<8x128xf32> to vector<8x128xbf16>
    %c0_3 = arith.constant 0 : index
    %c0_4 = arith.constant 0 : index
    %11 = vector.load %arg2[%c0_3, %c0_4] : memref<128x128xbf16, #tpu.memory_space<vmem>>, vector<128x128xbf16>
    %cst = arith.constant dense<0.000000e+00> : vector<8x128xf32>
    %12 = tpu.matmul %10, %11, %cst {dimension_numbers = #tpu.dot_dimension_numbers<[1], [0], [0], [1], [0, 0, 1, 1], [], []>} : vector<8x128xbf16>, vector<128x128xbf16>, vector<8x128xf32> -> vector<8x128xf32>
    %c0_5 = arith.constant 0 : index
    %c0_6 = arith.constant 0 : index
    %c0_7 = arith.constant 0 : index
    %13 = vector.load %arg11[%c0_5, %c0_6, %c0_7] : memref<3x8x128xf32, #tpu.memory_space<vmem>>, vector<1x8x128xf32>
    %14 = vector.shape_cast %13 : vector<1x8x128xf32> to vector<8x128xf32>
    %c0_8 = arith.constant 0 : index
    %c0_9 = arith.constant 0 : index
    %c0_10 = arith.constant 0 : index
    %15 = vector.load %arg12[%c0_8, %c0_9, %c0_10] : memref<3x8x128xf32, #tpu.memory_space<vmem>>, vector<1x8x128xf32>
    %16 = vector.shape_cast %15 : vector<1x8x128xf32> to vector<8x128xf32>
    %17 = arith.truncf %12 : vector<8x128xf32> to vector<8x128xbf16>
    %c0_11 = arith.constant 0 : index
    %c0_12 = arith.constant 0 : index
    %c0_13 = arith.constant 0 : index
    %18 = vector.load %arg5[%c0_11, %c0_12, %c0_13] : memref<3x128x512xbf16, #tpu.memory_space<vmem>>, vector<1x128x512xbf16>
    %19 = vector.shape_cast %18 : vector<1x128x512xbf16> to vector<128x512xbf16>
    %cst_14 = arith.constant dense<0.000000e+00> : vector<8x512xf32>
    %20 = tpu.matmul %17, %19, %cst_14 {dimension_numbers = #tpu.dot_dimension_numbers<[1], [0], [0], [1], [0, 0, 1, 1], [], []>} : vector<8x128xbf16>, vector<128x512xbf16>, vector<8x512xf32> -> vector<8x512xf32>
    %21 = arith.truncf %14 : vector<8x128xf32> to vector<8x128xbf16>
    %c0_15 = arith.constant 0 : index
    %c0_16 = arith.constant 0 : index
    %c0_17 = arith.constant 0 : index
    %22 = vector.load %arg6[%c0_15, %c0_16, %c0_17] : memref<3x128x512xbf16, #tpu.memory_space<vmem>>, vector<1x128x512xbf16>
    %23 = vector.shape_cast %22 : vector<1x128x512xbf16> to vector<128x512xbf16>
    %cst_18 = arith.constant dense<0.000000e+00> : vector<8x512xf32>
    %24 = tpu.matmul %21, %23, %cst_18 {dimension_numbers = #tpu.dot_dimension_numbers<[1], [0], [0], [1], [0, 0, 1, 1], [], []>} : vector<8x128xbf16>, vector<128x512xbf16>, vector<8x512xf32> -> vector<8x512xf32>
    %25 = arith.addf %20, %24 : vector<8x512xf32>
    %c0_19 = arith.constant 0 : index
    %c0_20 = arith.constant 0 : index
    %c0_21 = arith.constant 0 : index
    %26 = vector.load %arg7[%c0_19, %c0_20, %c0_21] : memref<3x1x512xf32, #tpu.memory_space<vmem>>, vector<1x1x512xf32>
    %27 = vector.shape_cast %26 : vector<1x1x512xf32> to vector<1x512xf32>
    %28 = vector.broadcast %27 : vector<1x512xf32> to vector<8x512xf32>
    %29 = arith.addf %25, %28 : vector<8x512xf32>
    %30 = vector.extract_strided_slice %29 {offsets = [0, 0], sizes = [8, 128], strides = [1, 1]} : vector<8x512xf32> to vector<8x128xf32>
    %31 = arith.negf %30 : vector<8x128xf32>
    %32 = math.exp %31 : vector<8x128xf32>
    %cst_22 = arith.constant 1.000000e+00 : f32
    %33 = vector.broadcast %cst_22 : f32 to vector<8x128xf32>
    %34 = arith.addf %33, %32 : vector<8x128xf32>
    %35 = arith.divf %33, %34 : vector<8x128xf32>
    %36 = vector.extract_strided_slice %29 {offsets = [0, 128], sizes = [8, 128], strides = [1, 1]} : vector<8x512xf32> to vector<8x128xf32>
    %37 = arith.negf %36 : vector<8x128xf32>
    %38 = math.exp %37 : vector<8x128xf32>
    %cst_23 = arith.constant 1.000000e+00 : f32
    %39 = vector.broadcast %cst_23 : f32 to vector<8x128xf32>
    %40 = arith.addf %39, %38 : vector<8x128xf32>
    %41 = arith.divf %39, %40 : vector<8x128xf32>
    %42 = vector.extract_strided_slice %29 {offsets = [0, 256], sizes = [8, 128], strides = [1, 1]} : vector<8x512xf32> to vector<8x128xf32>
    %43 = math.tanh %42 : vector<8x128xf32>
    %44 = vector.extract_strided_slice %29 {offsets = [0, 384], sizes = [8, 128], strides = [1, 1]} : vector<8x512xf32> to vector<8x128xf32>
    %45 = arith.negf %44 : vector<8x128xf32>
    %46 = math.exp %45 : vector<8x128xf32>
    %cst_24 = arith.constant 1.000000e+00 : f32
    %47 = vector.broadcast %cst_24 : f32 to vector<8x128xf32>
    %48 = arith.addf %47, %46 : vector<8x128xf32>
    %49 = arith.divf %47, %48 : vector<8x128xf32>
    %50 = arith.mulf %41, %16 : vector<8x128xf32>
    %51 = arith.mulf %35, %43 : vector<8x128xf32>
    %52 = arith.addf %50, %51 : vector<8x128xf32>
    %53 = math.tanh %52 : vector<8x128xf32>
    %54 = arith.mulf %49, %53 : vector<8x128xf32>
    %c0_25 = arith.constant 0 : index
    %c0_26 = arith.constant 0 : index
    %c0_27 = arith.constant 0 : index
    %55 = vector.load %arg11[%c0_25, %c0_26, %c0_27] : memref<3x8x128xf32, #tpu.memory_space<vmem>>, vector<1x8x128xf32>
    %56 = vector.shape_cast %55 : vector<1x8x128xf32> to vector<8x128xf32>
    %57 = vector.shape_cast %54 : vector<8x128xf32> to vector<1x8x128xf32>
    tpu.vector_store %arg11[%c0_25, %c0_26, %c0_27], %57 {strides = array<i32>} : memref<3x8x128xf32, #tpu.memory_space<vmem>>, vector<1x8x128xf32>,
    %c0_28 = arith.constant 0 : index
    %c0_29 = arith.constant 0 : index
    %c0_30 = arith.constant 0 : index
    %58 = vector.load %arg12[%c0_28, %c0_29, %c0_30] : memref<3x8x128xf32, #tpu.memory_space<vmem>>, vector<1x8x128xf32>
    %59 = vector.shape_cast %58 : vector<1x8x128xf32> to vector<8x128xf32>
    %60 = vector.shape_cast %52 : vector<8x128xf32> to vector<1x8x128xf32>
    tpu.vector_store %arg12[%c0_28, %c0_29, %c0_30], %60 {strides = array<i32>} : memref<3x8x128xf32, #tpu.memory_space<vmem>>, vector<1x8x128xf32>,
    %c1 = arith.constant 1 : index
    %c0_31 = arith.constant 0 : index
    %c0_32 = arith.constant 0 : index
    %61 = vector.load %arg11[%c1, %c0_31, %c0_32] : memref<3x8x128xf32, #tpu.memory_space<vmem>>, vector<1x8x128xf32>
    %62 = vector.shape_cast %61 : vector<1x8x128xf32> to vector<8x128xf32>
    %c1_33 = arith.constant 1 : index
    %c0_34 = arith.constant 0 : index
    %c0_35 = arith.constant 0 : index
    %63 = vector.load %arg12[%c1_33, %c0_34, %c0_35] : memref<3x8x128xf32, #tpu.memory_space<vmem>>, vector<1x8x128xf32>
    %64 = vector.shape_cast %63 : vector<1x8x128xf32> to vector<8x128xf32>
    %65 = arith.truncf %54 : vector<8x128xf32> to vector<8x128xbf16>
    %c1_36 = arith.constant 1 : index
    %c0_37 = arith.constant 0 : index
    %c0_38 = arith.constant 0 : index
    %66 = vector.load %arg5[%c1_36, %c0_37, %c0_38] : memref<3x128x512xbf16, #tpu.memory_space<vmem>>, vector<1x128x512xbf16>
    %67 = vector.shape_cast %66 : vector<1x128x512xbf16> to vector<128x512xbf16>
    %cst_39 = arith.constant dense<0.000000e+00> : vector<8x512xf32>
    %68 = tpu.matmul %65, %67, %cst_39 {dimension_numbers = #tpu.dot_dimension_numbers<[1], [0], [0], [1], [0, 0, 1, 1], [], []>} : vector<8x128xbf16>, vector<128x512xbf16>, vector<8x512xf32> -> vector<8x512xf32>
    %69 = arith.truncf %62 : vector<8x128xf32> to vector<8x128xbf16>
    %c1_40 = arith.constant 1 : index
    %c0_41 = arith.constant 0 : index
    %c0_42 = arith.constant 0 : index
    %70 = vector.load %arg6[%c1_40, %c0_41, %c0_42] : memref<3x128x512xbf16, #tpu.memory_space<vmem>>, vector<1x128x512xbf16>
    %71 = vector.shape_cast %70 : vector<1x128x512xbf16> to vector<128x512xbf16>
    %cst_43 = arith.constant dense<0.000000e+00> : vector<8x512xf32>
    %72 = tpu.matmul %69, %71, %cst_43 {dimension_numbers = #tpu.dot_dimension_numbers<[1], [0], [0], [1], [0, 0, 1, 1], [], []>} : vector<8x128xbf16>, vector<128x512xbf16>, vector<8x512xf32> -> vector<8x512xf32>
    %73 = arith.addf %68, %72 : vector<8x512xf32>
    %c1_44 = arith.constant 1 : index
    %c0_45 = arith.constant 0 : index
    %c0_46 = arith.constant 0 : index
    %74 = vector.load %arg7[%c1_44, %c0_45, %c0_46] : memref<3x1x512xf32, #tpu.memory_space<vmem>>, vector<1x1x512xf32>
    %75 = vector.shape_cast %74 : vector<1x1x512xf32> to vector<1x512xf32>
    %76 = vector.broadcast %75 : vector<1x512xf32> to vector<8x512xf32>
    %77 = arith.addf %73, %76 : vector<8x512xf32>
    %78 = vector.extract_strided_slice %77 {offsets = [0, 0], sizes = [8, 128], strides = [1, 1]} : vector<8x512xf32> to vector<8x128xf32>
    %79 = arith.negf %78 : vector<8x128xf32>
    %80 = math.exp %79 : vector<8x128xf32>
    %cst_47 = arith.constant 1.000000e+00 : f32
    %81 = vector.broadcast %cst_47 : f32 to vector<8x128xf32>
    %82 = arith.addf %81, %80 : vector<8x128xf32>
    %83 = arith.divf %81, %82 : vector<8x128xf32>
    %84 = vector.extract_strided_slice %77 {offsets = [0, 128], sizes = [8, 128], strides = [1, 1]} : vector<8x512xf32> to vector<8x128xf32>
    %85 = arith.negf %84 : vector<8x128xf32>
    %86 = math.exp %85 : vector<8x128xf32>
    %cst_48 = arith.constant 1.000000e+00 : f32
    %87 = vector.broadcast %cst_48 : f32 to vector<8x128xf32>
    %88 = arith.addf %87, %86 : vector<8x128xf32>
    %89 = arith.divf %87, %88 : vector<8x128xf32>
    %90 = vector.extract_strided_slice %77 {offsets = [0, 256], sizes = [8, 128], strides = [1, 1]} : vector<8x512xf32> to vector<8x128xf32>
    %91 = math.tanh %90 : vector<8x128xf32>
    %92 = vector.extract_strided_slice %77 {offsets = [0, 384], sizes = [8, 128], strides = [1, 1]} : vector<8x512xf32> to vector<8x128xf32>
    %93 = arith.negf %92 : vector<8x128xf32>
    %94 = math.exp %93 : vector<8x128xf32>
    %cst_49 = arith.constant 1.000000e+00 : f32
    %95 = vector.broadcast %cst_49 : f32 to vector<8x128xf32>
    %96 = arith.addf %95, %94 : vector<8x128xf32>
    %97 = arith.divf %95, %96 : vector<8x128xf32>
    %98 = arith.mulf %89, %64 : vector<8x128xf32>
    %99 = arith.mulf %83, %91 : vector<8x128xf32>
    %100 = arith.addf %98, %99 : vector<8x128xf32>
    %101 = math.tanh %100 : vector<8x128xf32>
    %102 = arith.mulf %97, %101 : vector<8x128xf32>
    %c1_50 = arith.constant 1 : index
    %c0_51 = arith.constant 0 : index
    %c0_52 = arith.constant 0 : index
    %103 = vector.load %arg11[%c1_50, %c0_51, %c0_52] : memref<3x8x128xf32, #tpu.memory_space<vmem>>, vector<1x8x128xf32>
    %104 = vector.shape_cast %103 : vector<1x8x128xf32> to vector<8x128xf32>
    %105 = vector.shape_cast %102 : vector<8x128xf32> to vector<1x8x128xf32>
    tpu.vector_store %arg11[%c1_50, %c0_51, %c0_52], %105 {strides = array<i32>} : memref<3x8x128xf32, #tpu.memory_space<vmem>>, vector<1x8x128xf32>,
    %c1_53 = arith.constant 1 : index
    %c0_54 = arith.constant 0 : index
    %c0_55 = arith.constant 0 : index
    %106 = vector.load %arg12[%c1_53, %c0_54, %c0_55] : memref<3x8x128xf32, #tpu.memory_space<vmem>>, vector<1x8x128xf32>
    %107 = vector.shape_cast %106 : vector<1x8x128xf32> to vector<8x128xf32>
    %108 = vector.shape_cast %100 : vector<8x128xf32> to vector<1x8x128xf32>
    tpu.vector_store %arg12[%c1_53, %c0_54, %c0_55], %108 {strides = array<i32>} : memref<3x8x128xf32, #tpu.memory_space<vmem>>, vector<1x8x128xf32>,
    %c2 = arith.constant 2 : index
    %c0_56 = arith.constant 0 : index
    %c0_57 = arith.constant 0 : index
    %109 = vector.load %arg11[%c2, %c0_56, %c0_57] : memref<3x8x128xf32, #tpu.memory_space<vmem>>, vector<1x8x128xf32>
    %110 = vector.shape_cast %109 : vector<1x8x128xf32> to vector<8x128xf32>
    %c2_58 = arith.constant 2 : index
    %c0_59 = arith.constant 0 : index
    %c0_60 = arith.constant 0 : index
    %111 = vector.load %arg12[%c2_58, %c0_59, %c0_60] : memref<3x8x128xf32, #tpu.memory_space<vmem>>, vector<1x8x128xf32>
    %112 = vector.shape_cast %111 : vector<1x8x128xf32> to vector<8x128xf32>
    %113 = arith.truncf %102 : vector<8x128xf32> to vector<8x128xbf16>
    %c2_61 = arith.constant 2 : index
    %c0_62 = arith.constant 0 : index
    %c0_63 = arith.constant 0 : index
    %114 = vector.load %arg5[%c2_61, %c0_62, %c0_63] : memref<3x128x512xbf16, #tpu.memory_space<vmem>>, vector<1x128x512xbf16>
    %115 = vector.shape_cast %114 : vector<1x128x512xbf16> to vector<128x512xbf16>
    %cst_64 = arith.constant dense<0.000000e+00> : vector<8x512xf32>
    %116 = tpu.matmul %113, %115, %cst_64 {dimension_numbers = #tpu.dot_dimension_numbers<[1], [0], [0], [1], [0, 0, 1, 1], [], []>} : vector<8x128xbf16>, vector<128x512xbf16>, vector<8x512xf32> -> vector<8x512xf32>
    %117 = arith.truncf %110 : vector<8x128xf32> to vector<8x128xbf16>
    %c2_65 = arith.constant 2 : index
    %c0_66 = arith.constant 0 : index
    %c0_67 = arith.constant 0 : index
    %118 = vector.load %arg6[%c2_65, %c0_66, %c0_67] : memref<3x128x512xbf16, #tpu.memory_space<vmem>>, vector<1x128x512xbf16>
    %119 = vector.shape_cast %118 : vector<1x128x512xbf16> to vector<128x512xbf16>
    %cst_68 = arith.constant dense<0.000000e+00> : vector<8x512xf32>
    %120 = tpu.matmul %117, %119, %cst_68 {dimension_numbers = #tpu.dot_dimension_numbers<[1], [0], [0], [1], [0, 0, 1, 1], [], []>} : vector<8x128xbf16>, vector<128x512xbf16>, vector<8x512xf32> -> vector<8x512xf32>
    %121 = arith.addf %116, %120 : vector<8x512xf32>
    %c2_69 = arith.constant 2 : index
    %c0_70 = arith.constant 0 : index
    %c0_71 = arith.constant 0 : index
    %122 = vector.load %arg7[%c2_69, %c0_70, %c0_71] : memref<3x1x512xf32, #tpu.memory_space<vmem>>, vector<1x1x512xf32>
    %123 = vector.shape_cast %122 : vector<1x1x512xf32> to vector<1x512xf32>
    %124 = vector.broadcast %123 : vector<1x512xf32> to vector<8x512xf32>
    %125 = arith.addf %121, %124 : vector<8x512xf32>
    %126 = vector.extract_strided_slice %125 {offsets = [0, 0], sizes = [8, 128], strides = [1, 1]} : vector<8x512xf32> to vector<8x128xf32>
    %127 = arith.negf %126 : vector<8x128xf32>
    %128 = math.exp %127 : vector<8x128xf32>
    %cst_72 = arith.constant 1.000000e+00 : f32
    %129 = vector.broadcast %cst_72 : f32 to vector<8x128xf32>
    %130 = arith.addf %129, %128 : vector<8x128xf32>
    %131 = arith.divf %129, %130 : vector<8x128xf32>
    %132 = vector.extract_strided_slice %125 {offsets = [0, 128], sizes = [8, 128], strides = [1, 1]} : vector<8x512xf32> to vector<8x128xf32>
    %133 = arith.negf %132 : vector<8x128xf32>
    %134 = math.exp %133 : vector<8x128xf32>
    %cst_73 = arith.constant 1.000000e+00 : f32
    %135 = vector.broadcast %cst_73 : f32 to vector<8x128xf32>
    %136 = arith.addf %135, %134 : vector<8x128xf32>
    %137 = arith.divf %135, %136 : vector<8x128xf32>
    %138 = vector.extract_strided_slice %125 {offsets = [0, 256], sizes = [8, 128], strides = [1, 1]} : vector<8x512xf32> to vector<8x128xf32>
    %139 = math.tanh %138 : vector<8x128xf32>
    %140 = vector.extract_strided_slice %125 {offsets = [0, 384], sizes = [8, 128], strides = [1, 1]} : vector<8x512xf32> to vector<8x128xf32>
    %141 = arith.negf %140 : vector<8x128xf32>
    %142 = math.exp %141 : vector<8x128xf32>
    %cst_74 = arith.constant 1.000000e+00 : f32
    %143 = vector.broadcast %cst_74 : f32 to vector<8x128xf32>
    %144 = arith.addf %143, %142 : vector<8x128xf32>
    %145 = arith.divf %143, %144 : vector<8x128xf32>
    %146 = arith.mulf %137, %112 : vector<8x128xf32>
    %147 = arith.mulf %131, %139 : vector<8x128xf32>
    %148 = arith.addf %146, %147 : vector<8x128xf32>
    %149 = math.tanh %148 : vector<8x128xf32>
    %150 = arith.mulf %145, %149 : vector<8x128xf32>
    %c2_75 = arith.constant 2 : index
    %c0_76 = arith.constant 0 : index
    %c0_77 = arith.constant 0 : index
    %151 = vector.load %arg11[%c2_75, %c0_76, %c0_77] : memref<3x8x128xf32, #tpu.memory_space<vmem>>, vector<1x8x128xf32>
    %152 = vector.shape_cast %151 : vector<1x8x128xf32> to vector<8x128xf32>
    %153 = vector.shape_cast %150 : vector<8x128xf32> to vector<1x8x128xf32>
    tpu.vector_store %arg11[%c2_75, %c0_76, %c0_77], %153 {strides = array<i32>} : memref<3x8x128xf32, #tpu.memory_space<vmem>>, vector<1x8x128xf32>,
    %c2_78 = arith.constant 2 : index
    %c0_79 = arith.constant 0 : index
    %c0_80 = arith.constant 0 : index
    %154 = vector.load %arg12[%c2_78, %c0_79, %c0_80] : memref<3x8x128xf32, #tpu.memory_space<vmem>>, vector<1x8x128xf32>
    %155 = vector.shape_cast %154 : vector<1x8x128xf32> to vector<8x128xf32>
    %156 = vector.shape_cast %148 : vector<8x128xf32> to vector<1x8x128xf32>
    tpu.vector_store %arg12[%c2_78, %c0_79, %c0_80], %156 {strides = array<i32>} : memref<3x8x128xf32, #tpu.memory_space<vmem>>, vector<1x8x128xf32>,
    %157 = arith.truncf %150 : vector<8x128xf32> to vector<8x128xbf16>
    %c0_81 = arith.constant 0 : index
    %c0_82 = arith.constant 0 : index
    %158 = vector.load %arg8[%c0_81, %c0_82] : memref<128x128xbf16, #tpu.memory_space<vmem>>, vector<128x128xbf16>
    %cst_83 = arith.constant dense<0.000000e+00> : vector<8x128xf32>
    %159 = tpu.matmul %157, %158, %cst_83 {dimension_numbers = #tpu.dot_dimension_numbers<[1], [0], [0], [1], [0, 0, 1, 1], [], []>} : vector<8x128xbf16>, vector<128x128xbf16>, vector<8x128xf32> -> vector<8x128xf32>
    %c0_84 = arith.constant 0 : index
    %c0_85 = arith.constant 0 : index
    %160 = vector.load %arg9[%c0_84, %c0_85] : memref<1x128xf32, #tpu.memory_space<vmem>>, vector<1x128xf32>
    %161 = vector.broadcast %160 : vector<1x128xf32> to vector<8x128xf32>
    %162 = arith.addf %159, %161 : vector<8x128xf32>
    %c0_86 = arith.constant 0 : index
    %c0_87 = arith.constant 0 : index
    %c0_88 = arith.constant 0 : index
    %163 = vector.load %arg10[%c0_86, %c0_87, %c0_88] : memref<1x8x128xf32, #tpu.memory_space<vmem>>, vector<1x8x128xf32>
    %164 = vector.shape_cast %163 : vector<1x8x128xf32> to vector<8x128xf32>
    %165 = vector.shape_cast %162 : vector<8x128xf32> to vector<1x8x128xf32>
    tpu.vector_store %arg10[%c0_86, %c0_87, %c0_88], %165 {strides = array<i32>} : memref<1x8x128xf32, #tpu.memory_space<vmem>>, vector<1x8x128xf32>,
    return
  }
  func.func @transform_0(%arg0: i32) -> (i32, i32, i32) {
    %c0_i32 = arith.constant 0 : i32
    %c0_i32_0 = arith.constant 0 : i32
    %c0_i32_1 = arith.constant 0 : i32
    return %arg0, %c0_i32, %c0_i32_0 : i32, i32, i32
  }
  func.func @transform_1(%arg0: i32) -> (i32, i32) {
    %c0_i32 = arith.constant 0 : i32
    %c0_i32_0 = arith.constant 0 : i32
    %c0_i32_1 = arith.constant 0 : i32
    return %c0_i32, %c0_i32_0 : i32, i32
  }
  func.func @transform_2(%arg0: i32) -> (i32, i32, i32) {
    %c0_i32 = arith.constant 0 : i32
    %c0_i32_0 = arith.constant 0 : i32
    %c0_i32_1 = arith.constant 0 : i32
    %c0_i32_2 = arith.constant 0 : i32
    return %c0_i32, %c0_i32_0, %c0_i32_1 : i32, i32, i32
  }
  func.func @transform_3(%arg0: i32) -> (i32, i32, i32) {
    %c0_i32 = arith.constant 0 : i32
    %c0_i32_0 = arith.constant 0 : i32
    %c0_i32_1 = arith.constant 0 : i32
    %c0_i32_2 = arith.constant 0 : i32
    return %c0_i32, %c0_i32_0, %c0_i32_1 : i32, i32, i32
  }
  func.func @transform_4(%arg0: i32) -> (i32, i32, i32) {
    %c0_i32 = arith.constant 0 : i32
    %c0_i32_0 = arith.constant 0 : i32
    %c0_i32_1 = arith.constant 0 : i32
    %c0_i32_2 = arith.constant 0 : i32
    return %c0_i32, %c0_i32_0, %c0_i32_1 : i32, i32, i32
  }
  func.func @transform_5(%arg0: i32) -> (i32, i32, i32) {
    %c0_i32 = arith.constant 0 : i32
    %c0_i32_0 = arith.constant 0 : i32
    %c0_i32_1 = arith.constant 0 : i32
    %c0_i32_2 = arith.constant 0 : i32
    return %c0_i32, %c0_i32_0, %c0_i32_1 : i32, i32, i32
  }
  func.func @transform_6(%arg0: i32) -> (i32, i32, i32) {
    %c0_i32 = arith.constant 0 : i32
    %c0_i32_0 = arith.constant 0 : i32
    %c0_i32_1 = arith.constant 0 : i32
    %c0_i32_2 = arith.constant 0 : i32
    return %c0_i32, %c0_i32_0, %c0_i32_1 : i32, i32, i32
  }
  func.func @transform_7(%arg0: i32) -> (i32, i32) {
    %c0_i32 = arith.constant 0 : i32
    %c0_i32_0 = arith.constant 0 : i32
    %c0_i32_1 = arith.constant 0 : i32
    return %c0_i32, %c0_i32_0 : i32, i32
  }
  func.func @transform_8(%arg0: i32) -> (i32, i32) {
    %c0_i32 = arith.constant 0 : i32
    %c0_i32_0 = arith.constant 0 : i32
    %c0_i32_1 = arith.constant 0 : i32
    return %c0_i32, %c0_i32_0 : i32, i32
  }
  func.func @transform_9(%arg0: i32) -> (i32, i32, i32) {
    %c0_i32 = arith.constant 0 : i32
    %c0_i32_0 = arith.constant 0 : i32
    %c0_i32_1 = arith.constant 0 : i32
    return %arg0, %c0_i32, %c0_i32_0 : i32, i32, i32
  }
  func.func @transform_10(%arg0: i32) -> (i32, i32, i32) {
    %c0_i32 = arith.constant 0 : i32
    %c0_i32_0 = arith.constant 0 : i32
    %c0_i32_1 = arith.constant 0 : i32
    %c0_i32_2 = arith.constant 0 : i32
    return %c0_i32, %c0_i32_0, %c0_i32_1 : i32, i32, i32
  }
  func.func @transform_11(%arg0: i32) -> (i32, i32, i32) {
    %c0_i32 = arith.constant 0 : i32
    %c0_i32_0 = arith.constant 0 : i32
    %c0_i32_1 = arith.constant 0 : i32
    %c0_i32_2 = arith.constant 0 : i32
    return %c0_i32, %c0_i32_0, %c0_i32_1 : i32, i32, i32
  }
}

</mosaic_0001>

<bundles_post_ra>
// kernel: generator_forward_seq.1
= control target key start
LH: loop header
LB: loop body
LE: loop exit
PB: predicated region body
PF: predicated region fallthrough
CT: control target
= control target key end

     0   :  { %s4229_s0 = inlined_call_operand.vmem [shape: s32[8,8,1], index: 0, kind: input, shape index: {}]   ;;  %s4230_s1 = inlined_call_operand.vmem [shape: bf16[128,128], index: 1, kind: input, shape index: {}]   ;;  %s4231_s2 = inlined_call_operand.vmem [shape: f32[3,8,128], index: 2, kind: input, shape index: {}]   ;;  %s4232_s3 = inlined_call_operand.hbm [shape: f32[3,8,128], index: 3, kind: input, shape index: {}]   ;;  %s4233_s4 = inlined_call_operand.hbm [shape: bf16[3,128,512], index: 4, kind: input, shape index: {}]   ;;  %s4234_s5 = inlined_call_operand.hbm [shape: bf16[3,128,512], index: 5, kind: input, shape index: {}]   ;;  %s4235_s6 = inlined_call_operand.hbm [shape: f32[3,1,512], index: 6, kind: input, shape index: {}]   ;;  %s4236_s7 = inlined_call_operand.hbm [shape: bf16[128,128], index: 7, kind: input, shape index: {}]   ;;  %s4237_s8 = inlined_call_operand.vmem [shape: f32[1,128], index: 8, kind: input, shape index: {}]   ;;  %s4238_s9 = inlined_call_operand.hbm [shape: f32[8,8,128], index: 9, kind: output, shape index: {0}]   ;;  %s4239_s10 = inlined_call_operand.hbm [shape: f32[3,8,128], index: 10, kind: output, shape index: {1}]   ;;  %s4240_s11 = inlined_call_operand.hbm [shape: f32[3,8,128], index: 11, kind: output, shape index: {2}]  }
   0x1   :  { %4256 = sst [smem:[#allocation26_spill]] %s4233_s4 }
   0x2   :  { %4257 = sst [smem:[#allocation27_spill]] %s4235_s6 }
   0x3   :  { %4258 = sst [smem:[#allocation28_spill]] %s4238_s9 }
   0x4   :  { %17 = vsyncpa [#allocation3], 0 }
   0x5   :  { %18 = vsyncpa [#allocation6], 0 }
   0x6   :  { %19 = vsyncpa [#allocation9], 0 }
   0x7   :  { %20 = vsyncpa [#allocation4], 0 }
   0x8   :  { %22 = vsyncpa [#allocation4 + $0x1], 0 }
   0x9   :  { %23 = vsyncpa [#allocation13], 0  ;;  %s3812_s17 = smov 0   ;;  %s3814_s18 = smov 0  }
   0xa   :  { %s3816_s19 = smov 0   ;;  %s3818_s20 = smov 0  }
   0xb LB: > { %4259 = sst [smem:[#allocation20_spill]] %s3718_s17  ;;  %s3833_s21 = sadd.s32 4294967295, %s3730_s20   ;;  %s3730_s20 = sphi %s3818_s20, %s4298_s20   ;;  %s3726_s19 = sphi %s3816_s19, %s4300_s19   ;;  %s3722_s18 = sphi %s3814_s18, %s4302_s18   ;;  %s3718_s17 = sphi %s3812_s17, %s4301_s17  }
   0xc   : > { %4260 = sst [smem:[#allocation21_spill]] %s3726_s19  ;;  %s2687_s22 = sadd.s32 4294967294, %s3730_s20  }
   0xd   : > { %4261 = sst [smem:[#allocation22_spill]] %s3730_s20  ;;  %s3837_s23 = sadd.s32 1, %s3730_s20  }
   0xe   : > { %4262 = sst [smem:[#allocation23_spill]] %s3837_s23  ;;  %s230_s24 = sadd.s32 1, %s3726_s19 }
   0xf   : > { %s227_s25 = ssub.s32 %s3730_s20, %s3837_s23  ;;  %p240_p0 = scmp.ne.s32.totalorder %s3726_s19, %s3722_s18 }
  0x10   : > { %p228_p1 = scmp.eq.s32.totalorder %s227_s25, 0  ;;  %p4242_p2 = scmp.eq.s32.totalorder %s3833_s21, 7 }
  0x11   : > { %p246_p3 = scmp.ne.s32.totalorder %s3722_s18, %s3718_s17  ;;  %p247_p4 = scmp.eq.s32.totalorder %s2687_s22, 7 }
  0x12   : > { %s3848_s26 = scalar_select %p228_p1, %s3726_s19, %s230_s24  }
  0x13   : > { %p3852_p5 = por %p4242_p2, %p240_p0  ;;  %p3856_p6 = por %p247_p4, %p246_p3 }
  0x14   : > { %4263 = sst [smem:[#allocation24_spill]] %s3848_s26  ;;  %p2688_p7 = scmp.ge.s32.totalorder %s3730_s20, 1 }
  0x15   : > { %s4264_s27 = scalar_select %p3852_p5, 1, 0 }
  0x16   : > { %s4265_s28 = scalar_select %p3856_p6, 1, 0 }
  0x17   : > { %p296_p8 = scmp.lt.s32.totalorder %s3730_s20, 9  ;;  %p4243_p10 = scmp.eq.s32.totalorder %s3833_s21, 0 }
  0x18   : > { %4266 = sst [smem:[#allocation25_spill]] %s4265_s28  ;;  %s3732_s30 = smov [#allocation5]  }
  0x19   : > { %p3864_p11 = pnand %p2688_p7, %p296_p8  ;;  %s327_s12 = sshll.u32 %s3732_s30, 4  ;;  %s328_s12 = int_to_ptr.vmem [resolvable:$true] %s327_s12 }
  0x1a   : > { %s3733_s14 = smov [#allocation8]   ;;  %s4269_s4 = sld [smem:[#allocation26_spill]] }
  0x1b   : > { %s4267_s29 = scalar_select %p3864_p11, 1, 0 }
  0x1c   : > { %p3021_p12 = pneg %p3864_p11  ;;  %s353_s15 = sshll.u32 %s3733_s14, 4  ;;  %s3876_s15 = int_to_ptr.vmem [resolvable:$true] %s353_s15 }
  0x1e   : > { %p3872_p13 = pnand %p4243_p10, %p3021_p12 }
  0x20   : > { %s3460_s24 = scalar_lea.hbm %s4269_s4, 12288  ;;  %p3886_p1 = pneg %p3872_p13 }
  0x21   : > { %p3461_p0 = scmp.ne.s32.totalorder %s4269_s4, %s3460_s24  ;;  %p3467_p7 = scmp.lt.u32.totalorder %s3460_s24, %s4269_s4 }
  0x23   : > { %p3463_p3 = pnand %p3886_p1, %p3461_p0 }
  0x25   : > { %p3464_p4 = pneg %p3463_p3 }
  0x27   : > { %p3469_p8 = pnand %p3467_p7, %p3464_p4 }
  0x29   : > { %3472 = shalt.err (!%p3469_p8)
}
  0x2a   : > { %s3473_s16 = scalar_lea.vmem %s328_s12, 12288  ;;  %p3481_p10 = scmp.lt.s32.totalorder %s328_s12, %s328_s12 }
  0x2b   : > { %p3474_p12 = scmp.ne.s32.totalorder %s328_s12, %s3473_s16  ;;  %p3482_p6 = scmp.lt.s32.totalorder %s3473_s16, %s3473_s16 }
  0x2d   : > { %p3476_p2 = pnand %p3474_p12, %p3886_p1  ;;  %p3483_p5 = por %p3482_p6, %p3481_p10 }
  0x2f   : > { %p3477_p9 = pneg %p3476_p2 }
  0x31   : > { %p3484_p11 = pnand %p3483_p5, %p3477_p9 }
  0x33   : > { %3487 = shalt.err (!%p3484_p11)
}
  0x34   : > { %s4251_s26 = smov 256   ;;  %s4252_s22 = smov 16  }
  0x35   : > { %3027 = dma.hbm_to_vmem [thread:$0]  (!%p3872_p13), %s4269_s4, 12288, %s328_s12, [#allocation6], %s4251_s26, %s4251_s26, %s4252_s22  }
  0x36   : > { %s4271_s6 = sld [smem:[#allocation27_spill]] }
  0x3c   : > { %s3488_s23 = scalar_lea.hbm %s4271_s6, 192 }
  0x3d   : > { %p3489_p2 = scmp.ne.s32.totalorder %s4271_s6, %s3488_s23  ;;  %p3495_p9 = scmp.lt.u32.totalorder %s3488_s23, %s4271_s6 }
  0x3f   : > { %p3491_p5 = pnand %p3489_p2, %p3886_p1 }
  0x41   : > { %p3492_p6 = pneg %p3491_p5 }
  0x43   : > { %p3497_p10 = pnand %p3495_p9, %p3492_p6 }
  0x45   : > { %3500 = shalt.err (!%p3497_p10)
}
  0x46   : > { %s3501_s12 = scalar_lea.vmem %s3876_s15, 192  ;;  %p3509_p4 = scmp.lt.s32.totalorder %s3876_s15, %s3876_s15 }
  0x47   : > { %p3502_p11 = scmp.ne.s32.totalorder %s3876_s15, %s3501_s12  ;;  %p3510_p7 = scmp.lt.s32.totalorder %s3501_s12, %s3501_s12 }
  0x49   : > { %p3504_p0 = pnand %p3502_p11, %p3886_p1  ;;  %p3511_p8 = por %p3510_p7, %p3509_p4 }
  0x4b   : > { %p3505_p3 = pneg %p3504_p0 }
  0x4d   : > { %p3512_p12 = pnand %p3511_p8, %p3505_p3 }
  0x4f   : > { %3515 = shalt.err (!%p3512_p12)
}
  0x50   : > { %s4253_s28 = smov 64   ;;  %s4254_s17 = smov 4  }
  0x51   : > { %3033 = dma.hbm_to_vmem [thread:$0]  (!%p3872_p13), %s4271_s6, 192, %s3876_s15, [#allocation9], %s4253_s28, %s4253_s28, %s4254_s17  }
  0x52   : > { %s3738_s19 = smov [#allocation2]   ;;  %s3516_s16 = scalar_lea.hbm %s4232_s3, 384 }
  0x53   : > { %s314_s24 = sshll.u32 %s3738_s19, 4  ;;  %p3517_p2 = scmp.ne.s32.totalorder %s4232_s3, %s3516_s16  ;;  %s315_s24 = int_to_ptr.vmem [resolvable:$true] %s314_s24 }
  0x54   : > { %p3523_p9 = scmp.lt.u32.totalorder %s3516_s16, %s4232_s3 }
  0x55   : > { %p3519_p5 = pnand %p3517_p2, %p3886_p1 }
  0x57   : > { %p3520_p6 = pneg %p3519_p5 }
  0x59   : > { %p3525_p10 = pnand %p3523_p9, %p3520_p6 }
  0x5b   : > { %3528 = shalt.err (!%p3525_p10)
}
  0x5c   : > { %s3529_s15 = scalar_lea.vmem %s315_s24, 384  ;;  %p3537_p4 = scmp.lt.s32.totalorder %s315_s24, %s315_s24 }
  0x5d   : > { %p3530_p11 = scmp.ne.s32.totalorder %s315_s24, %s3529_s15  ;;  %p3538_p7 = scmp.lt.s32.totalorder %s3529_s15, %s3529_s15 }
  0x5f   : > { %p3532_p0 = pnand %p3530_p11, %p3886_p1  ;;  %p3539_p8 = por %p3538_p7, %p3537_p4 }
  0x61   : > { %p3533_p3 = pneg %p3532_p0 }
  0x63   : > { %p3540_p12 = pnand %p3539_p8, %p3533_p3 }
  0x65   : > { %3543 = shalt.err (!%p3540_p12)
}
  0x66   : > { %s3739_s26 = smov 128   ;;  %s3740_s20 = smov 8  }
  0x67   : > { %3024 = dma.hbm_to_vmem [thread:$0]  (!%p3872_p13), %s4232_s3, 384, %s315_s24, [#allocation3], %s3739_s26, %s3739_s26, %s3740_s20  }
  0x68   : > { %s3741_s23 = smov [#allocation7]   ;;  %s3742_s25 = smov [#allocation10]  }
  0x69   : > { %s340_s19 = sshll.u32 %s3741_s23, 4  ;;  %s366_s14 = sshll.u32 %s3742_s25, 4  ;;  %s341_s19 = int_to_ptr.vmem [resolvable:$true] %s340_s19  ;;  %s367_s14 = int_to_ptr.vmem [resolvable:$true] %s366_s14 }
  0x6a   : > { %s3544_s15 = scalar_lea.hbm %s4234_s5, 12288 }
  0x6b   : > { %p3545_p2 = scmp.ne.s32.totalorder %s4234_s5, %s3544_s15  ;;  %p3551_p9 = scmp.lt.u32.totalorder %s3544_s15, %s4234_s5 }
  0x6d   : > { %p3547_p5 = pnand %p3545_p2, %p3886_p1 }
  0x6f   : > { %p3548_p6 = pneg %p3547_p5 }
  0x71   : > { %p3553_p10 = pnand %p3551_p9, %p3548_p6 }
  0x73   : > { %3556 = shalt.err (!%p3553_p10)
}
  0x74   : > { %s3557_s24 = scalar_lea.vmem %s341_s19, 12288  ;;  %p3565_p4 = scmp.lt.s32.totalorder %s341_s19, %s341_s19 }
  0x75   : > { %p3558_p11 = scmp.ne.s32.totalorder %s341_s19, %s3557_s24  ;;  %p3566_p7 = scmp.lt.s32.totalorder %s3557_s24, %s3557_s24 }
  0x77   : > { %p3560_p0 = pnand %p3558_p11, %p3886_p1  ;;  %p3567_p8 = por %p3566_p7, %p3565_p4 }
  0x79   : > { %p3561_p3 = pneg %p3560_p0 }
  0x7b   : > { %p3568_p12 = pnand %p3567_p8, %p3561_p3 }
  0x7d   : > { %3571 = shalt.err (!%p3568_p12)
}
  0x7e   : > { %s4272_s28 = smov 16   ;;  %s4273_s17 = smov 256  }
  0x7f   : > { %3030 = dma.hbm_to_vmem [thread:$0]  (!%p3872_p13), %s4234_s5, 12288, %s341_s19, [#allocation6], %s4273_s17, %s4273_s17, %s4272_s28  }
  0x80   : > { %s3572_s4 = scalar_lea.hbm %s4236_s7, 1024 }
  0x81   : > { %p3573_p2 = scmp.ne.s32.totalorder %s4236_s7, %s3572_s4  ;;  %p3579_p9 = scmp.lt.u32.totalorder %s3572_s4, %s4236_s7 }
  0x83   : > { %p3575_p5 = pnand %p3573_p2, %p3886_p1 }
  0x85   : > { %p3576_p6 = pneg %p3575_p5 }
  0x87   : > { %p3581_p10 = pnand %p3579_p9, %p3576_p6 }
  0x89   : > { %3584 = shalt.err (!%p3581_p10)
}
  0x8a   : > { %s3585_s12 = scalar_lea.vmem %s367_s14, 1024  ;;  %p3593_p4 = scmp.lt.s32.totalorder %s367_s14, %s367_s14 }
  0x8b   : > { %p3586_p11 = scmp.ne.s32.totalorder %s367_s14, %s3585_s12  ;;  %p3594_p7 = scmp.lt.s32.totalorder %s3585_s12, %s3585_s12 }
  0x8d   : > { %p3588_p0 = pnand %p3586_p11, %p3886_p1  ;;  %p3595_p8 = por %p3594_p7, %p3593_p4 }
  0x8f   : > { %p3589_p3 = pneg %p3588_p0 }
  0x91   : > { %p3596_p12 = pnand %p3595_p8, %p3589_p3 }
  0x93   : > { %3599 = shalt.err (!%p3596_p12)
}
  0x94   : > { %s4274_s19 = smov 4   ;;  %s4275_s15 = smov 64  }
  0x95   : > { %3036 = dma.hbm_to_vmem [thread:$0]  (!%p3872_p13), %s4236_s7, 1024, %s367_s14, [#allocation9], %s4275_s15, %s4275_s15, %s4274_s19  }
  0x96   : > { %p4276_p2 = scmp.ne.s32.totalorder %s4267_s29, 0 }
  0x97   : > { %p4277_p1 = scmp.eq.s32.totalorder (!%p4276_p2), %s3833_s21, 0 }
  0x98   : > { %392 = sbr.rel (%p4276_p2) target bundleno = 1541 (0x605), region = 56 }
  0x9f   : > { %3697 = dma.done.wait (%p4277_p1), [#allocation3], 384   ;;  %p4278_p5 = pmov %p4277_p1 }
  0xa0   : > { %p4279_p6 = pmov %p4277_p1 }
  0xa1   : > { %3699 = vsyncadd (%p4278_p5), [#allocation3], 4294966912 }
  0xa2   : > { %3701 = dma.done.wait (%p4279_p6), [#allocation6], 24576   ;;  %p4280_p9 = pmov %p4277_p1 }
  0xa3   : > { %p4281_p10 = pmov %p4277_p1 }
  0xa4   : > { %3703 = vsyncadd (%p4280_p9), [#allocation6], 4294942720 }
  0xa5   : > { %3705 = dma.done.wait (%p4281_p10), [#allocation9], 1216   ;;  %p4282_p13 = pmov %p4277_p1 }
  0xa6   : > { %s440_s29 = sand.u32 1, %s3722_s18   ;;  %p447_p11 = scmp.lt.s32.totalorder %s3833_s21, 7 }
  0xa7   : > { %3707 = vsyncadd (%p4282_p13), [#allocation9], 4294966080  ;;  %s4009_s13 = sshll.u32 %s440_s29, 3  ;;  %p4283_p0 = scmp.ne.s32.totalorder %s3833_s21, 0 }
  0xa8   : > { %s448_s30 = scalar_select %p447_p11, %s3833_s21, 7 }
  0xa9   : > { %s442_s26 = scalar_lea.vmem [#allocation11], %s4009_s13  ;;  %455 = sbr.rel (%p4283_p0) target bundleno = 176 (0xb0), region = 80  ;;  %v456_v0 = vld [vmem:[%s4231_s2] sm:$0xff] (!%p4283_p0)  ;;  %v457_v1 = vld [vmem:[%s4231_s2 + $0x8] sm:$0xff] (!%p4283_p0)  ;;  %v458_v2 = vld [vmem:[%s4231_s2 + $0x10] sm:$0xff] (!%p4283_p0) }
  0xaa   : > { %s2702_s14 = sshll.u32 %s448_s30, 3  ;;  %459 = vst [vmem:[#allocation12] sm:$0xff] (!%p4283_p0), %v456_v0  ;;  %460 = vst [vmem:[#allocation12 + $0x8] sm:$0xff] (!%p4283_p0), %v457_v1  ;;  %v462_v3 = vld [vmem:[#allocation2] sm:$0xff] (!%p4283_p0)  ;;  %v463_v4 = vld [vmem:[#allocation2 + $0x8] sm:$0xff] (!%p4283_p0) }
  0xab   : > { %s450_s9 = scalar_lea.vmem %s4229_s0, %s2702_s14  ;;  %461 = vst [vmem:[#allocation12 + $0x10] sm:$0xff] (!%p4283_p0), %v458_v2  ;;  %v464_v5 = vld [vmem:[#allocation2 + $0x10] sm:$0xff] (!%p4283_p0)  ;;  %465 = vst [vmem:[#allocation14] sm:$0xff] (!%p4283_p0), %v462_v3 }
  0xac   : > { %466 = vst [vmem:[#allocation14 + $0x8] sm:$0xff] (!%p4283_p0), %v463_v4  ;;  %467 = vst [vmem:[#allocation14 + $0x10] sm:$0xff] (!%p4283_p0), %v464_v5 }
  0xb0 PF: > { %v468_v6 = vld [vmem:[%s450_s9] sm:$0xff]  ;;  %v3743_v8 = vmov 0   ;;  %v3744_v9 = vmov 0.0   ;;  %v3109_v10 = vld [vmem:[%s4230_s1 + $0x8] sm:$0xff]   ;;  %vm3745_vm0 = vmmov 0   ;;  %v3110_v11 = vld [vmem:[%s4230_s1 + $0x10] sm:$0xff]   ;;  %v469_v52 = vlaneseq }
  0xb1   : > { %v3108_v7 = vld [vmem:[%s4230_s1] sm:$0xff]   ;;  %3107 = vset.pattern.permute.xlu0 %v3743_v8  ;;  %2951 = vmatprep.subr.bf16.mxu0 %v3744_v9  ;;  %v3116_v12 = vld [vmem:[#allocation7 + $0x4] ss:$16 sps:$4 sm:$0xff]   ;;  %v3118_v13 = vld [vmem:[#allocation7] ss:$16 sps:$4 sm:$0xff]   ;;  %s3747_s12 = smov [#allocation12]  }
  0xb2   : > { %472 = vperm.xlu0 %3107, %v468_v6   ;;  %2952 = vmatpush3.bf16.msra.mxu0 %v3108_v7  ;;  %v3111_v14 = vld [vmem:[%s4230_s1 + $0x18] sm:$0xff]   ;;  %v3112_v17 = vld [vmem:[%s4230_s1 + $0x20] sm:$0xff]   ;;  %v3113_v21 = vld [vmem:[%s4230_s1 + $0x28] sm:$0xff]   ;;  %v470_v53 = vand.u32 127, %v469_v52  ;;  %v3746_v57 = vmov 1.0|1.0  }
  0xb3   : > { %2953 = vmatprep.subr.bf16.mxu0 %v3744_v9  ;;  %842 = vmatprep.mubr.bf16.mxu1 %v3743_v8  ;;  %v3122_v15 = vld [vmem:[#allocation7 + $0x24] ss:$16 sps:$4 sm:$0xff]   ;;  %v3124_v16 = vld [vmem:[#allocation7 + $0x20] ss:$16 sps:$4 sm:$0xff]   ;;  %v3114_v24 = vld [vmem:[%s4230_s1 + $0x30] sm:$0xff]   ;;  %s2541_s19 = sshll.u32 %s3747_s12, 4  ;;  %s2542_s19 = int_to_ptr.vmem [resolvable:$true] %s2541_s19 }
  0xb4   : > { %2967 = vmatprep.mubr.msk.bf16.mxu0 %vm3745_vm0, %v3744_v9  ;;  %810 = vmatprep.subr.bf16.mxu1 %v3116_v12  ;;  %v3128_v18 = vld [vmem:[#allocation7 + $0x44] ss:$16 sps:$4 sm:$0xff]   ;;  %v3130_v19 = vld [vmem:[#allocation7 + $0x40] ss:$16 sps:$4 sm:$0xff]   ;;  %v3121_v28 = vld [vmem:[#allocation7 + $0xc] ss:$16 sps:$4 sm:$0xff]   ;;  %p3607_p12 = scmp.lt.s32.totalorder %s2542_s19, %s2542_s19 }
  0xb5   : > { %811 = vmatpush1.bf16.msra.mxu1 %v3118_v13  ;;  %v3134_v20 = vld [vmem:[#allocation7 + $0x64] ss:$16 sps:$4 sm:$0xff]   ;;  %v3136_v22 = vld [vmem:[#allocation7 + $0x60] ss:$16 sps:$4 sm:$0xff]   ;;  %v3119_v55 = vld [vmem:[#allocation7 + $0x8] ss:$16 sps:$4 sm:$0xff]  }
  0xb6   : > { %2954 = vmatpush3.bf16.msra.mxu0 %v3109_v10  ;;  %812 = vmatprep.subr.bf16.mxu1 %v3122_v15  ;;  %v3140_v23 = vld [vmem:[#allocation7 + $0x84] ss:$16 sps:$4 sm:$0xff]   ;;  %v3142_v25 = vld [vmem:[#allocation7 + $0x80] ss:$16 sps:$4 sm:$0xff]   ;;  %v3127_v56 = vld [vmem:[#allocation7 + $0x2c] ss:$16 sps:$4 sm:$0xff]  }
  0xb7   : > { %2955 = vmatprep.subr.bf16.mxu0 %v3744_v9  ;;  %v3115_v26 = vld [vmem:[%s4230_s1 + $0x38] sm:$0xff]   ;;  %v3125_v58 = vld [vmem:[#allocation7 + $0x28] ss:$16 sps:$4 sm:$0xff]   ;;  %v3133_v59 = vld [vmem:[#allocation7 + $0x4c] ss:$16 sps:$4 sm:$0xff]   ;;  %s3600_s15 = scalar_lea.vmem %s2542_s19, 384 }
  0xb8   : > { %v3146_v27 = vld [vmem:[#allocation7 + $0xa4] ss:$16 sps:$4 sm:$0xff]   ;;  %v3148_v29 = vld [vmem:[#allocation7 + $0xa0] ss:$16 sps:$4 sm:$0xff]   ;;  %v3131_v60 = vld [vmem:[#allocation7 + $0x48] ss:$16 sps:$4 sm:$0xff]   ;;  %p3601_p3 = scmp.ne.s32.totalorder %s2542_s19, %s3600_s15  ;;  %p3608_p2 = scmp.lt.s32.totalorder %s3600_s15, %s3600_s15 }
  0xb9   : > { %813 = vmatpush1.bf16.msra.mxu1 %v3124_v16  ;;  %v3152_v30 = vld [vmem:[#allocation7 + $0xc4] ss:$16 sps:$4 sm:$0xff]   ;;  %v3154_v31 = vld [vmem:[#allocation7 + $0xc0] ss:$16 sps:$4 sm:$0xff]   ;;  %v3139_v61 = vld [vmem:[#allocation7 + $0x6c] ss:$16 sps:$4 sm:$0xff]  }
  0xba   : > { %2956 = vmatpush3.bf16.msra.mxu0 %v3110_v11  ;;  %814 = vmatprep.subr.bf16.mxu1 %v3128_v18  ;;  %v3158_v32 = vld [vmem:[#allocation7 + $0xe4] ss:$16 sps:$4 sm:$0xff]   ;;  %v3160_v33 = vld [vmem:[#allocation7 + $0xe0] ss:$16 sps:$4 sm:$0xff]   ;;  %v3137_v62 = vld [vmem:[#allocation7 + $0x68] ss:$16 sps:$4 sm:$0xff]   ;;  %p3609_p1 = por %p3608_p2, %p3607_p12 }
  0xbb   : > { %2957 = vmatprep.subr.bf16.mxu0 %v3744_v9  ;;  %v582_v34 = vld [vmem:[#allocation12] sm:$0xff]  ;;  %v3166_v35 = vld [vmem:[#allocation5 + $0x4] ss:$16 sps:$4 sm:$0xff]   ;;  %v3143_v0 = vld [vmem:[#allocation7 + $0x88] ss:$16 sps:$4 sm:$0xff]   ;;  %p4284_p4 = scmp.eq.s32.totalorder %s3833_s21, 7 }
  0xbc   : > { %v3164_v36 = vld [vmem:[#allocation5] ss:$16 sps:$4 sm:$0xff]   ;;  %v4063_v37 = vpack.c.bf16 %v582_v34, %v582_v34  ;;  %v3172_v38 = vld [vmem:[#allocation5 + $0x24] ss:$16 sps:$4 sm:$0xff]   ;;  %v3145_v63 = vld [vmem:[#allocation7 + $0x8c] ss:$16 sps:$4 sm:$0xff]  }
  0xbd   : > { %815 = vmatpush1.bf16.msra.mxu1 %v3130_v19  ;;  %v3170_v39 = vld [vmem:[#allocation5 + $0x20] ss:$16 sps:$4 sm:$0xff]   ;;  %v3178_v40 = vld [vmem:[#allocation5 + $0x44] ss:$16 sps:$4 sm:$0xff]   ;;  %v3151_v1 = vld [vmem:[#allocation7 + $0xac] ss:$16 sps:$4 sm:$0xff]   ;;  %p3602_p7 = pnand %p3601_p3, %p4284_p4 }
  0xbe   : > { %2958 = vmatpush3.bf16.msra.mxu0 %v3111_v14  ;;  %816 = vmatprep.subr.bf16.mxu1 %v3134_v20  ;;  %v3176_v41 = vld [vmem:[#allocation5 + $0x40] ss:$16 sps:$4 sm:$0xff]   ;;  %v3184_v42 = vld [vmem:[#allocation5 + $0x64] ss:$16 sps:$4 sm:$0xff]   ;;  %v3149_v2 = vld [vmem:[#allocation7 + $0xa8] ss:$16 sps:$4 sm:$0xff]  }
  0xbf   : > { %2959 = vmatprep.subr.bf16.mxu0 %v3744_v9  ;;  %v3182_v43 = vld [vmem:[#allocation5 + $0x60] ss:$16 sps:$4 sm:$0xff]   ;;  %v3190_v44 = vld [vmem:[#allocation5 + $0x84] ss:$16 sps:$4 sm:$0xff]   ;;  %v3157_v3 = vld [vmem:[#allocation7 + $0xcc] ss:$16 sps:$4 sm:$0xff]   ;;  %p3603_p8 = pneg %p3602_p7 }
  0xc0   : > { %v3188_v45 = vld [vmem:[#allocation5 + $0x80] ss:$16 sps:$4 sm:$0xff]   ;;  %v3196_v46 = vld [vmem:[#allocation5 + $0xa4] ss:$16 sps:$4 sm:$0xff]   ;;  %v3155_v4 = vld [vmem:[#allocation7 + $0xc8] ss:$16 sps:$4 sm:$0xff]  }
  0xc1   : > { %817 = vmatpush1.bf16.msra.mxu1 %v3136_v22  ;;  %v3194_v47 = vld [vmem:[#allocation5 + $0xa0] ss:$16 sps:$4 sm:$0xff]   ;;  %v3202_v48 = vld [vmem:[#allocation5 + $0xc4] ss:$16 sps:$4 sm:$0xff]   ;;  %v3163_v5 = vld [vmem:[#allocation7 + $0xec] ss:$16 sps:$4 sm:$0xff]   ;;  %p3610_p5 = pnand %p3609_p1, %p3603_p8 }
  0xc2   : > { %2960 = vmatpush3.bf16.msra.mxu0 %v3112_v17  ;;  %818 = vmatprep.subr.bf16.mxu1 %v3140_v23  ;;  %v3200_v49 = vld [vmem:[#allocation5 + $0xc0] ss:$16 sps:$4 sm:$0xff]   ;;  %v3208_v50 = vld [vmem:[#allocation5 + $0xe4] ss:$16 sps:$4 sm:$0xff]   ;;  %v3161_v6 = vld [vmem:[#allocation7 + $0xe8] ss:$16 sps:$4 sm:$0xff]  }
  0xc3   : > { %2961 = vmatprep.subr.bf16.mxu0 %v3744_v9  ;;  %v3206_v51 = vld [vmem:[#allocation5 + $0xe0] ss:$16 sps:$4 sm:$0xff]   ;;  %v3169_v7 = vld [vmem:[#allocation5 + $0xc] ss:$16 sps:$4 sm:$0xff]   ;;  %v3167_v10 = vld [vmem:[#allocation5 + $0x8] ss:$16 sps:$4 sm:$0xff]  }
  0xc4   : > { %v3175_v11 = vld [vmem:[#allocation5 + $0x2c] ss:$16 sps:$4 sm:$0xff]   ;;  %v3173_v12 = vld [vmem:[#allocation5 + $0x28] ss:$16 sps:$4 sm:$0xff]  }
  0xc5   : > { %819 = vmatpush1.bf16.msra.mxu1 %v3142_v25  ;;  %v3181_v13 = vld [vmem:[#allocation5 + $0x4c] ss:$16 sps:$4 sm:$0xff]   ;;  %v3179_v14 = vld [vmem:[#allocation5 + $0x48] ss:$16 sps:$4 sm:$0xff]   ;;  %v3214_v25 = vld [vmem:[#allocation7 + $0x104] ss:$16 sps:$4 sm:$0xff]  }
  0xc6   : > { %2962 = vmatpush3.bf16.msra.mxu0 %v3113_v21  ;;  %820 = vmatprep.subr.bf16.mxu1 %v3146_v27  ;;  %v3187_v15 = vld [vmem:[#allocation5 + $0x6c] ss:$16 sps:$4 sm:$0xff]   ;;  %v3185_v16 = vld [vmem:[#allocation5 + $0x68] ss:$16 sps:$4 sm:$0xff]  }
  0xc7   : > { %2963 = vmatprep.subr.bf16.mxu0 %v3744_v9  ;;  %v3193_v17 = vld [vmem:[#allocation5 + $0x8c] ss:$16 sps:$4 sm:$0xff]   ;;  %v3191_v18 = vld [vmem:[#allocation5 + $0x88] ss:$16 sps:$4 sm:$0xff]  }
  0xc8   : > { %v3199_v19 = vld [vmem:[#allocation5 + $0xac] ss:$16 sps:$4 sm:$0xff]   ;;  %v3197_v20 = vld [vmem:[#allocation5 + $0xa8] ss:$16 sps:$4 sm:$0xff]  }
  0xc9   : > { %821 = vmatpush1.bf16.msra.mxu1 %v3148_v29  ;;  %v3205_v21 = vld [vmem:[#allocation5 + $0xcc] ss:$16 sps:$4 sm:$0xff]   ;;  %v3203_v22 = vld [vmem:[#allocation5 + $0xc8] ss:$16 sps:$4 sm:$0xff]  }
  0xca   : > { %2964 = vmatpush3.bf16.msra.mxu0 %v3114_v24  ;;  %822 = vmatprep.subr.bf16.mxu1 %v3152_v30  ;;  %v3211_v23 = vld [vmem:[#allocation5 + $0xec] ss:$16 sps:$4 sm:$0xff]   ;;  %v3209_v24 = vld [vmem:[#allocation5 + $0xe8] ss:$16 sps:$4 sm:$0xff]  }
  0xcb   : > { %2965 = vmatprep.subr.bf16.mxu0 %v3744_v9 }
  0xcd   : > { %823 = vmatpush1.bf16.msra.mxu1 %v3154_v31 }
  0xce   : > { %2966 = vmatpush3.bf16.msra.mxu0 %v3115_v26  ;;  %824 = vmatprep.subr.bf16.mxu1 %v3158_v32  ;;  %v3217_v26 = vld [vmem:[#allocation7 + $0x10c] ss:$16 sps:$4 sm:$0xff]   ;;  %v3212_v32 = vld [vmem:[#allocation7 + $0x100] ss:$16 sps:$4 sm:$0xff]  }
  0xcf   : > { %851 = vmatprep.subr.bf16.mxu0 %v3121_v28 }
  0xd1   : > { %825 = vmatpush1.bf16.msra.mxu1 %v3160_v33  ;;  %v3215_v33 = vld [vmem:[#allocation7 + $0x108] ss:$16 sps:$4 sm:$0xff]  }
  0xd2   : > { %1052 = vmatprep.subr.bf16.mxu1 %v3166_v35 }
  0xd4   : > { %843 = vmatmul.mubr.bf16.vlgmr.msra.gmra.mrb[0].mxu1 %v4063_v37 }
  0xd5   : > { %1053 = vmatpush1.bf16.msra.mxu1 %v3164_v36  ;;  %1084 = vmatprep.mubr.bf16.mxu1 %v3743_v8  ;;  %v3220_v36 = vld [vmem:[#allocation7 + $0x124] ss:$16 sps:$4 sm:$0xff]  }
  0xd6   : > { %1054 = vmatprep.subr.bf16.mxu1 %v3172_v38 }
  0xd9   : > { %1055 = vmatpush1.bf16.msra.mxu1 %v3170_v39 }
  0xda   : > { %1056 = vmatprep.subr.bf16.mxu1 %v3178_v40  ;;  %v3218_v40 = vld [vmem:[#allocation7 + $0x120] ss:$16 sps:$4 sm:$0xff]  }
  0xdd   : > { %1057 = vmatpush1.bf16.msra.mxu1 %v3176_v41  ;;  %v3221_v41 = vld [vmem:[#allocation7 + $0x128] ss:$16 sps:$4 sm:$0xff]  }
  0xde   : > { %1058 = vmatprep.subr.bf16.mxu1 %v3184_v42  ;;  %v3226_v42 = vld [vmem:[#allocation7 + $0x144] ss:$16 sps:$4 sm:$0xff]  }
  0xe1   : > { %1059 = vmatpush1.bf16.msra.mxu1 %v3182_v43  ;;  %v3229_v43 = vld [vmem:[#allocation7 + $0x14c] ss:$16 sps:$4 sm:$0xff]  }
  0xe2   : > { %1060 = vmatprep.subr.bf16.mxu1 %v3190_v44  ;;  %v3224_v44 = vld [vmem:[#allocation7 + $0x140] ss:$16 sps:$4 sm:$0xff]  }
  0xe5   : > { %1061 = vmatpush1.bf16.msra.mxu1 %v3188_v45  ;;  %v3227_v45 = vld [vmem:[#allocation7 + $0x148] ss:$16 sps:$4 sm:$0xff]  }
  0xe6   : > { %1062 = vmatprep.subr.bf16.mxu1 %v3196_v46  ;;  %v3232_v46 = vld [vmem:[#allocation7 + $0x164] ss:$16 sps:$4 sm:$0xff]  }
  0xe9   : > { %1063 = vmatpush1.bf16.msra.mxu1 %v3194_v47  ;;  %v3235_v47 = vld [vmem:[#allocation7 + $0x16c] ss:$16 sps:$4 sm:$0xff]  }
  0xea   : > { %1064 = vmatprep.subr.bf16.mxu1 %v3202_v48  ;;  %v3230_v48 = vld [vmem:[#allocation7 + $0x160] ss:$16 sps:$4 sm:$0xff]  }
  0xed   : > { %1065 = vmatpush1.bf16.msra.mxu1 %v3200_v49  ;;  %v3233_v49 = vld [vmem:[#allocation7 + $0x168] ss:$16 sps:$4 sm:$0xff]  }
  0xee   : > { %1066 = vmatprep.subr.bf16.mxu1 %v3208_v50 }
  0xf1   : > { %1067 = vmatpush1.bf16.msra.mxu1 %v3206_v51 }
  0xf2   : > { %1418 = vmatprep.subr.bf16.mxu1 %v3214_v25  ;;  %v3278_v25 = vld [vmem:[#allocation5 + $0x160] ss:$16 sps:$4 sm:$0xff]  }
 0x131   : > { %v473_v54 = vpop.permute.xlu0 %472 }
 0x132   : > { %vm474_vm1 = vcmp.eq.s32.totalorder %v470_v53, %v473_v54 }
 0x133   : > { %vm2713_vm2 = vmpackc.low %vm474_vm1, %vm474_vm1 }
 0x134   : > { %2968 = vmatmul.mubr.msk.bf16.vlgmr.msra.gmra.mrb[0].mxu0 %vm2713_vm2, %v3746_v57  ;;  %v3241_v57 = vld [vmem:[#allocation7 + $0x18c] ss:$16 sps:$4 sm:$0xff]  }
 0x135   : > { %852 = vmatpush1.bf16.msra.mxu0 %v3119_v55  ;;  %883 = vmatprep.mubr.bf16.mxu0 %v3743_v8  ;;  %v3238_v55 = vld [vmem:[#allocation7 + $0x184] ss:$16 sps:$4 sm:$0xff]  }
 0x136   : > { %853 = vmatprep.subr.bf16.mxu0 %v3127_v56  ;;  %v3236_v56 = vld [vmem:[#allocation7 + $0x180] ss:$16 sps:$4 sm:$0xff]  }
 0x139   : > { %854 = vmatpush1.bf16.msra.mxu0 %v3125_v58  ;;  %v3239_v58 = vld [vmem:[#allocation7 + $0x188] ss:$16 sps:$4 sm:$0xff]  }
 0x13a   : > { %855 = vmatprep.subr.bf16.mxu0 %v3133_v59  ;;  %v3244_v59 = vld [vmem:[#allocation7 + $0x1a4] ss:$16 sps:$4 sm:$0xff]  }
 0x13d   : > { %856 = vmatpush1.bf16.msra.mxu0 %v3131_v60  ;;  %v3242_v60 = vld [vmem:[#allocation7 + $0x1a0] ss:$16 sps:$4 sm:$0xff]  }
 0x13e   : > { %857 = vmatprep.subr.bf16.mxu0 %v3139_v61  ;;  %v3247_v61 = vld [vmem:[#allocation7 + $0x1ac] ss:$16 sps:$4 sm:$0xff]  }
 0x141   : > { %858 = vmatpush1.bf16.msra.mxu0 %v3137_v62  ;;  %v3245_v62 = vld [vmem:[#allocation7 + $0x1a8] ss:$16 sps:$4 sm:$0xff]  }
 0x142   : > { %859 = vmatprep.subr.bf16.mxu0 %v3145_v63  ;;  %v3250_v63 = vld [vmem:[#allocation7 + $0x1c4] ss:$16 sps:$4 sm:$0xff]  }
 0x145   : > { %860 = vmatpush1.bf16.msra.mxu0 %v3143_v0  ;;  %v3248_v0 = vld [vmem:[#allocation7 + $0x1c0] ss:$16 sps:$4 sm:$0xff]  }
 0x146   : > { %861 = vmatprep.subr.bf16.mxu0 %v3151_v1  ;;  %v3253_v1 = vld [vmem:[#allocation7 + $0x1cc] ss:$16 sps:$4 sm:$0xff]  }
 0x149   : > { %862 = vmatpush1.bf16.msra.mxu0 %v3149_v2  ;;  %v3251_v2 = vld [vmem:[#allocation7 + $0x1c8] ss:$16 sps:$4 sm:$0xff]  }
 0x14a   : > { %863 = vmatprep.subr.bf16.mxu0 %v3157_v3  ;;  %v3256_v3 = vld [vmem:[#allocation7 + $0x1e4] ss:$16 sps:$4 sm:$0xff]  }
 0x14d   : > { %864 = vmatpush1.bf16.msra.mxu0 %v3155_v4  ;;  %v3254_v4 = vld [vmem:[#allocation7 + $0x1e0] ss:$16 sps:$4 sm:$0xff]  }
 0x14e   : > { %865 = vmatprep.subr.bf16.mxu0 %v3163_v5  ;;  %v3259_v5 = vld [vmem:[#allocation7 + $0x1ec] ss:$16 sps:$4 sm:$0xff]  }
 0x151   : > { %866 = vmatpush1.bf16.msra.mxu0 %v3161_v6  ;;  %v3257_v6 = vld [vmem:[#allocation7 + $0x1e8] ss:$16 sps:$4 sm:$0xff]  }
 0x152   : > { %1093 = vmatprep.subr.bf16.mxu0 %v3169_v7  ;;  %v1187_v7 = vld [vmem:[#allocation12 + $0x8] sm:$0xff] }
 0x154   : > { %884 = vmatmul.mubr.bf16.vlgmr.msra.gmra.mrb[4].mxu0 %v4063_v37  ;;  %v3223_v37 = vld [vmem:[#allocation7 + $0x12c] ss:$16 sps:$4 sm:$0xff]  }
 0x155   : > { %1094 = vmatpush1.bf16.msra.mxu0 %v3167_v10  ;;  %1125 = vmatprep.mubr.bf16.mxu0 %v3743_v8  ;;  %v1224_v10 = vpack.c.bf16 %v1187_v7, %v1187_v7 }
 0x156   : > { %1095 = vmatprep.subr.bf16.mxu0 %v3175_v11  ;;  %v3262_v11 = vld [vmem:[#allocation5 + $0x104] ss:$16 sps:$4 sm:$0xff]  }
 0x159   : > { %1096 = vmatpush1.bf16.msra.mxu0 %v3173_v12  ;;  %v3265_v12 = vld [vmem:[#allocation5 + $0x10c] ss:$16 sps:$4 sm:$0xff]  }
 0x15a   : > { %1097 = vmatprep.subr.bf16.mxu0 %v3181_v13  ;;  %v3260_v13 = vld [vmem:[#allocation5 + $0x100] ss:$16 sps:$4 sm:$0xff]  }
 0x15d   : > { %1098 = vmatpush1.bf16.msra.mxu0 %v3179_v14  ;;  %v3263_v14 = vld [vmem:[#allocation5 + $0x108] ss:$16 sps:$4 sm:$0xff]  }
 0x15e   : > { %1099 = vmatprep.subr.bf16.mxu0 %v3187_v15  ;;  %v3268_v15 = vld [vmem:[#allocation5 + $0x124] ss:$16 sps:$4 sm:$0xff]  }
 0x161   : > { %1100 = vmatpush1.bf16.msra.mxu0 %v3185_v16  ;;  %v3271_v16 = vld [vmem:[#allocation5 + $0x12c] ss:$16 sps:$4 sm:$0xff]  }
 0x162   : > { %1101 = vmatprep.subr.bf16.mxu0 %v3193_v17  ;;  %v3266_v17 = vld [vmem:[#allocation5 + $0x120] ss:$16 sps:$4 sm:$0xff]  }
 0x165   : > { %1102 = vmatpush1.bf16.msra.mxu0 %v3191_v18  ;;  %v3269_v18 = vld [vmem:[#allocation5 + $0x128] ss:$16 sps:$4 sm:$0xff]  }
 0x166   : > { %1103 = vmatprep.subr.bf16.mxu0 %v3199_v19  ;;  %v3274_v19 = vld [vmem:[#allocation5 + $0x144] ss:$16 sps:$4 sm:$0xff]  }
 0x169   : > { %1104 = vmatpush1.bf16.msra.mxu0 %v3197_v20  ;;  %v3277_v20 = vld [vmem:[#allocation5 + $0x14c] ss:$16 sps:$4 sm:$0xff]  }
 0x16a   : > { %1105 = vmatprep.subr.bf16.mxu0 %v3205_v21  ;;  %v3272_v21 = vld [vmem:[#allocation5 + $0x140] ss:$16 sps:$4 sm:$0xff]  }
 0x16d   : > { %1106 = vmatpush1.bf16.msra.mxu0 %v3203_v22  ;;  %v3275_v22 = vld [vmem:[#allocation5 + $0x148] ss:$16 sps:$4 sm:$0xff]  }
 0x16e   : > { %1107 = vmatprep.subr.bf16.mxu0 %v3211_v23  ;;  %v3280_v23 = vld [vmem:[#allocation5 + $0x164] ss:$16 sps:$4 sm:$0xff]  }
 0x171   : > { %1108 = vmatpush1.bf16.msra.mxu0 %v3209_v24  ;;  %v3283_v24 = vld [vmem:[#allocation5 + $0x16c] ss:$16 sps:$4 sm:$0xff]  }
 0x172   : > { %1459 = vmatprep.subr.bf16.mxu0 %v3217_v26  ;;  %v3281_v26 = vld [vmem:[#allocation5 + $0x168] ss:$16 sps:$4 sm:$0xff]  }
 0x1a7   : > { %v4071_v27 = vpop.f32.mrb[0].mxu1 }
 0x1a8   : > { %v4073_v28 = vpop.f32.mrb[1].mxu1 }
 0x1a9   : > { %v848_v29 = vpop.f32.mrb[2].mxu1 }
 0x1aa   : > { %v849_v30 = vpop.f32.mrb[3].mxu1  ;;  %v3286_v29 = vld [vmem:[#allocation5 + $0x184] ss:$16 sps:$4 sm:$0xff]  }
 0x1ab   : > { %v3289_v30 = vld [vmem:[#allocation5 + $0x18c] ss:$16 sps:$4 sm:$0xff]  }
 0x207   : > { %v576_v31 = vpop.f32.mrb[0].mxu0 }
 0x208   : > { %v584_v34 = vpack.c.bf16 %v576_v31, %v576_v31  ;;  %v2969_v35 = vpop.f32.mrb[1].mxu0  ;;  %v3284_v31 = vld [vmem:[#allocation5 + $0x180] ss:$16 sps:$4 sm:$0xff]  }
 0x209   : > { %v579_v38 = vpop.f32.mrb[2].mxu0  ;;  %v3295_v35 = vld [vmem:[#allocation5 + $0x1ac] ss:$16 sps:$4 sm:$0xff]  }
 0x20a   : > { %v2970_v39 = vpop.f32.mrb[3].mxu0  ;;  %1085 = vmatmul.mubr.bf16.vlgmr.msra.gmra.mrb[4].mxu1 %v584_v34  ;;  %1126 = vmatmul.mubr.bf16.vlgmr.msra.gmra.mrb[8].mxu0 %v584_v34  ;;  %v3290_v34 = vld [vmem:[#allocation5 + $0x1a0] ss:$16 sps:$4 sm:$0xff]   ;;  %v3301_v38 = vld [vmem:[#allocation5 + $0x1cc] ss:$16 sps:$4 sm:$0xff]  }
 0x20b   : > { %1419 = vmatpush1.bf16.msra.mxu1 %v3212_v32  ;;  %1460 = vmatpush1.bf16.msra.mxu0 %v3215_v33  ;;  %v3287_v32 = vld [vmem:[#allocation5 + $0x188] ss:$16 sps:$4 sm:$0xff]   ;;  %v3292_v33 = vld [vmem:[#allocation5 + $0x1a4] ss:$16 sps:$4 sm:$0xff]   ;;  %v3296_v39 = vld [vmem:[#allocation5 + $0x1c0] ss:$16 sps:$4 sm:$0xff]  }
 0x20c   : > { %1420 = vmatprep.subr.bf16.mxu1 %v3220_v36  ;;  %1461 = vmatprep.subr.bf16.mxu0 %v3223_v37  ;;  %v3293_v36 = vld [vmem:[#allocation5 + $0x1a8] ss:$16 sps:$4 sm:$0xff]   ;;  %v3298_v37 = vld [vmem:[#allocation5 + $0x1c4] ss:$16 sps:$4 sm:$0xff]  }
 0x20d   : > { %1450 = vmatprep.mubr.bf16.mxu1 %v3743_v8  ;;  %1491 = vmatprep.mubr.bf16.mxu0 %v3743_v8 }
 0x20f   : > { %1421 = vmatpush1.bf16.msra.mxu1 %v3218_v40  ;;  %1462 = vmatpush1.bf16.msra.mxu0 %v3221_v41  ;;  %v3299_v40 = vld [vmem:[#allocation5 + $0x1c8] ss:$16 sps:$4 sm:$0xff]   ;;  %v3304_v41 = vld [vmem:[#allocation5 + $0x1e4] ss:$16 sps:$4 sm:$0xff]  }
 0x210   : > { %1422 = vmatprep.subr.bf16.mxu1 %v3226_v42  ;;  %1463 = vmatprep.subr.bf16.mxu0 %v3229_v43  ;;  %v3307_v42 = vld [vmem:[#allocation5 + $0x1ec] ss:$16 sps:$4 sm:$0xff]   ;;  %v3302_v43 = vld [vmem:[#allocation5 + $0x1e0] ss:$16 sps:$4 sm:$0xff]  }
 0x213   : > { %1423 = vmatpush1.bf16.msra.mxu1 %v3224_v44  ;;  %1464 = vmatpush1.bf16.msra.mxu0 %v3227_v45  ;;  %v3305_v44 = vld [vmem:[#allocation5 + $0x1e8] ss:$16 sps:$4 sm:$0xff]   ;;  %v3310_v45 = vld [vmem:[#allocation7 + $0x204] ss:$16 sps:$4 sm:$0xff]  }
 0x214   : > { %1424 = vmatprep.subr.bf16.mxu1 %v3232_v46  ;;  %1465 = vmatprep.subr.bf16.mxu0 %v3235_v47  ;;  %v3313_v46 = vld [vmem:[#allocation7 + $0x20c] ss:$16 sps:$4 sm:$0xff]   ;;  %v1137_v47 = vshrl.u32 %v469_v52, 7 }
 0x217   : > { %1425 = vmatpush1.bf16.msra.mxu1 %v3230_v48  ;;  %1466 = vmatpush1.bf16.msra.mxu0 %v3233_v49  ;;  %v4084_v48 = vsub.s32 0, %v1137_v47  ;;  %v1134_v49 = vld [vmem:[#allocation8] sm:$0xf] }
 0x218   : > { %1426 = vmatprep.subr.bf16.mxu1 %v3238_v55  ;;  %1467 = vmatprep.subr.bf16.mxu0 %v3241_v57 }
 0x21b   : > { %1427 = vmatpush1.bf16.msra.mxu1 %v3236_v56  ;;  %1468 = vmatpush1.bf16.msra.mxu0 %v3239_v58 }
 0x21c   : > { %1428 = vmatprep.subr.bf16.mxu1 %v3244_v59  ;;  %1469 = vmatprep.subr.bf16.mxu0 %v3247_v61 }
 0x21f   : > { %1429 = vmatpush1.bf16.msra.mxu1 %v3242_v60  ;;  %1470 = vmatpush1.bf16.msra.mxu0 %v3245_v62 }
 0x220   : > { %1430 = vmatprep.subr.bf16.mxu1 %v3250_v63  ;;  %1471 = vmatprep.subr.bf16.mxu0 %v3253_v1  ;;  %v4094_v63 = vsub.s32 3, %v1137_v47 }
 0x223   : > { %1431 = vmatpush1.bf16.msra.mxu1 %v3248_v0  ;;  %1472 = vmatpush1.bf16.msra.mxu0 %v3251_v2 }
 0x224   : > { %1432 = vmatprep.subr.bf16.mxu1 %v3256_v3  ;;  %1473 = vmatprep.subr.bf16.mxu0 %v3259_v5 }
 0x227   : > { %v4077_v50 = vpop.f32.mrb[4].mxu0  ;;  %1433 = vmatpush1.bf16.msra.mxu1 %v3254_v4  ;;  %1474 = vmatpush1.bf16.msra.mxu0 %v3257_v6 }
 0x228   : > { %v4079_v51 = vpop.f32.mrb[5].mxu0  ;;  %1660 = vmatprep.subr.bf16.mxu1 %v3262_v11  ;;  %1701 = vmatprep.subr.bf16.mxu0 %v3265_v12 }
 0x229   : > { %v889_v53 = vpop.f32.mrb[6].mxu0 }
 0x22a   : > { %v890_v54 = vpop.f32.mrb[7].mxu0  ;;  %1451 = vmatmul.mubr.bf16.vlgmr.msra.gmra.mrb[8].mxu1 %v1224_v10  ;;  %1492 = vmatmul.mubr.bf16.vlgmr.msra.gmra.mrb[12].mxu0 %v1224_v10  ;;  %v4086_v53 = vsub.s32 1, %v1137_v47 }
 0x22b   : > { %1692 = vmatprep.mubr.bf16.mxu1 %v3743_v8  ;;  %1661 = vmatpush1.bf16.msra.mxu1 %v3260_v13  ;;  %v1139_v54 = vrot.slane %v1134_v49, %v4084_v48 }
 0x22c   : > { %1702 = vmatpush1.bf16.msra.mxu0 %v3263_v14  ;;  %1733 = vmatprep.mubr.bf16.mxu0 %v3743_v8  ;;  %v1143_v57 = vrot.slane %v1134_v49, %v4086_v53 }
 0x22d   : > { %1662 = vmatprep.subr.bf16.mxu1 %v3268_v15  ;;  %1703 = vmatprep.subr.bf16.mxu0 %v3271_v16 }
 0x22f   : > { %1663 = vmatpush1.bf16.msra.mxu1 %v3266_v17 }
 0x230   : > { %1704 = vmatpush1.bf16.msra.mxu0 %v3269_v18  ;;  %1664 = vmatprep.subr.bf16.mxu1 %v3274_v19  ;;  %v583_v18 = vld [vmem:[#allocation14] sm:$0xff] }
 0x231   : > { %1705 = vmatprep.subr.bf16.mxu0 %v3277_v20 }
 0x233   : > { %1665 = vmatpush1.bf16.msra.mxu1 %v3272_v21 }
 0x234   : > { %1706 = vmatpush1.bf16.msra.mxu0 %v3275_v22  ;;  %1666 = vmatprep.subr.bf16.mxu1 %v3280_v23 }
 0x235   : > { %1707 = vmatprep.subr.bf16.mxu0 %v3283_v24 }
 0x237   : > { %1667 = vmatpush1.bf16.msra.mxu1 %v3278_v25 }
 0x238   : > { %1708 = vmatpush1.bf16.msra.mxu0 %v3281_v26  ;;  %1668 = vmatprep.subr.bf16.mxu1 %v3286_v29 }
 0x239   : > { %1709 = vmatprep.subr.bf16.mxu0 %v3289_v30  ;;  %v3308_v30 = vld [vmem:[#allocation7 + $0x200] ss:$16 sps:$4 sm:$0xff]  }
 0x23b   : > { %1669 = vmatpush1.bf16.msra.mxu1 %v3284_v31  ;;  %v3311_v31 = vld [vmem:[#allocation7 + $0x208] ss:$16 sps:$4 sm:$0xff]  }
 0x23c   : > { %1710 = vmatpush1.bf16.msra.mxu0 %v3287_v32  ;;  %1670 = vmatprep.subr.bf16.mxu1 %v3292_v33  ;;  %v3316_v33 = vld [vmem:[#allocation7 + $0x224] ss:$16 sps:$4 sm:$0xff]  }
 0x23d   : > { %1711 = vmatprep.subr.bf16.mxu0 %v3295_v35  ;;  %v3314_v35 = vld [vmem:[#allocation7 + $0x220] ss:$16 sps:$4 sm:$0xff]  }
 0x23f   : > { %1671 = vmatpush1.bf16.msra.mxu1 %v3290_v34  ;;  %v3319_v34 = vld [vmem:[#allocation7 + $0x22c] ss:$16 sps:$4 sm:$0xff]  }
 0x240   : > { %1712 = vmatpush1.bf16.msra.mxu0 %v3293_v36  ;;  %1672 = vmatprep.subr.bf16.mxu1 %v3298_v37  ;;  %v3317_v36 = vld [vmem:[#allocation7 + $0x228] ss:$16 sps:$4 sm:$0xff]   ;;  %v3322_v37 = vld [vmem:[#allocation7 + $0x244] ss:$16 sps:$4 sm:$0xff]  }
 0x241   : > { %1713 = vmatprep.subr.bf16.mxu0 %v3301_v38  ;;  %v3325_v38 = vld [vmem:[#allocation7 + $0x24c] ss:$16 sps:$4 sm:$0xff]  }
 0x243   : > { %1673 = vmatpush1.bf16.msra.mxu1 %v3296_v39  ;;  %v3320_v39 = vld [vmem:[#allocation7 + $0x240] ss:$16 sps:$4 sm:$0xff]  }
 0x244   : > { %1714 = vmatpush1.bf16.msra.mxu0 %v3299_v40  ;;  %1674 = vmatprep.subr.bf16.mxu1 %v3304_v41  ;;  %v3323_v40 = vld [vmem:[#allocation7 + $0x248] ss:$16 sps:$4 sm:$0xff]   ;;  %v3328_v41 = vld [vmem:[#allocation7 + $0x264] ss:$16 sps:$4 sm:$0xff]  }
 0x245   : > { %1715 = vmatprep.subr.bf16.mxu0 %v3307_v42  ;;  %v3331_v42 = vld [vmem:[#allocation7 + $0x26c] ss:$16 sps:$4 sm:$0xff]  }
 0x247   : > { %1675 = vmatpush1.bf16.msra.mxu1 %v3302_v43  ;;  %v3326_v43 = vld [vmem:[#allocation7 + $0x260] ss:$16 sps:$4 sm:$0xff]  }
 0x248   : > { %1716 = vmatpush1.bf16.msra.mxu0 %v3305_v44  ;;  %2027 = vmatprep.subr.bf16.mxu1 %v3310_v45  ;;  %v3329_v44 = vld [vmem:[#allocation7 + $0x268] ss:$16 sps:$4 sm:$0xff]  }
 0x249   : > { %2068 = vmatprep.subr.bf16.mxu0 %v3313_v46 }
 0x2dd   : > { %v1086_v55 = vpop.f32.mrb[4].mxu1  ;;  %v1127_v56 = vpop.f32.mrb[8].mxu0 }
 0x2de   : > { %v1087_v58 = vadd.f32 %v1086_v55, %v4071_v27  ;;  %v1128_v59 = vadd.f32 %v1127_v56, %v4077_v50  ;;  %v1088_v60 = vpop.f32.mrb[5].mxu1  ;;  %v1129_v61 = vpop.f32.mrb[9].mxu0  ;;  %v1151_v27 = vrot.slane %v1134_v49, %v4094_v63  ;;  %v4097_v50 = vsub.s32 2, %v1137_v47 }
 0x2df   : > { %v1089_v62 = vadd.f32 %v1088_v60, %v4073_v28  ;;  %v1130_v52 = vadd.f32 %v1129_v61, %v4079_v51  ;;  %v1090_v0 = vpop.f32.mrb[6].mxu1  ;;  %v1131_v1 = vpop.f32.mrb[10].mxu0  ;;  %v3337_v60 = vld [vmem:[#allocation7 + $0x28c] ss:$16 sps:$4 sm:$0xff]   ;;  %v3335_v61 = vld [vmem:[#allocation7 + $0x288] ss:$16 sps:$4 sm:$0xff]  }
 0x2e0   : > { %v1156_v2 = vadd.f32 %v1139_v54, %v1087_v58  ;;  %v1091_v3 = vpop.f32.mrb[7].mxu1  ;;  %v1132_v4 = vpop.f32.mrb[11].mxu0  ;;  %v1147_v28 = vrot.slane %v1134_v49, %v4097_v50  ;;  %v3334_v58 = vld [vmem:[#allocation7 + $0x284] ss:$16 sps:$4 sm:$0xff]   ;;  %v3343_v0 = vld [vmem:[#allocation7 + $0x2ac] ss:$16 sps:$4 sm:$0xff]  }
 0x2e1   : > { %v1157_v5 = vadd.f32 %v1143_v57, %v1089_v62  ;;  %v1159_v10 = vadd.f32 %v1151_v27, %v1130_v52  ;;  %v3340_v62 = vld [vmem:[#allocation7 + $0x2a4] ss:$16 sps:$4 sm:$0xff]   ;;  %v3338_v52 = vld [vmem:[#allocation7 + $0x2a0] ss:$16 sps:$4 sm:$0xff]   ;;  %v3341_v1 = vld [vmem:[#allocation7 + $0x2a8] ss:$16 sps:$4 sm:$0xff]  }
 0x2e2   : > { %v2779_v6 = vmul.f32 -1.442695, %v1156_v2  ;;  %v1158_v11 = vadd.f32 %v1147_v28, %v1128_v59  ;;  %v3332_v59 = vld [vmem:[#allocation7 + $0x280] ss:$16 sps:$4 sm:$0xff]   ;;  %v3346_v2 = vld [vmem:[#allocation7 + $0x2c4] ss:$16 sps:$4 sm:$0xff]  }
 0x2e3   : > { %v2780_v7 = vmul.f32 -1.442695, %v1157_v5  ;;  %v2781_v51 = vmul.f32 -1.442695, %v1159_v10  ;;  %v3344_v3 = vld [vmem:[#allocation7 + $0x2c0] ss:$16 sps:$4 sm:$0xff]  }
 0x2e4   : > { %3412 = vpow2.f32 %v2779_v6  ;;  %v3349_v4 = vld [vmem:[#allocation7 + $0x2cc] ss:$16 sps:$4 sm:$0xff]   ;;  %v3347_v5 = vld [vmem:[#allocation7 + $0x2c8] ss:$16 sps:$4 sm:$0xff]   ;;  %v3352_v6 = vld [vmem:[#allocation7 + $0x2e4] ss:$16 sps:$4 sm:$0xff]  }
 0x2e5   : > { %3414 = vpow2.f32 %v2780_v7  ;;  %v3350_v7 = vld [vmem:[#allocation7 + $0x2e0] ss:$16 sps:$4 sm:$0xff]   ;;  %v3355_v27 = vld [vmem:[#allocation7 + $0x2ec] ss:$16 sps:$4 sm:$0xff]   ;;  %v3353_v10 = vld [vmem:[#allocation7 + $0x2e8] ss:$16 sps:$4 sm:$0xff]  }
 0x2e6   : > { %3416 = vpow2.f32 %v2781_v51  ;;  %v1796_v28 = vld [vmem:[#allocation12 + $0x10] sm:$0xff] }
 0x2e7   : > { %3418 = vtanh.f32 %v1158_v11  ;;  %v1833_v51 = vpack.c.bf16 %v1796_v28, %v1796_v28  ;;  %v3358_v11 = vld [vmem:[#allocation5 + $0x204] ss:$16 sps:$4 sm:$0xff]  }
 0x2ee   : > { %v3413_v12 = vpop.eup %3412 }
 0x2ef   : > { %v3415_v13 = vpop.eup %3414  ;;  %v1163_v14 = vadd.f32 1.0, %v3413_v12  ;;  %v3361_v12 = vld [vmem:[#allocation5 + $0x20c] ss:$16 sps:$4 sm:$0xff]  }
 0x2f0   : > { %v1169_v15 = vadd.f32 1.0, %v3415_v13  ;;  %v3417_v16 = vpop.eup %3416  ;;  %v3356_v13 = vld [vmem:[#allocation5 + $0x200] ss:$16 sps:$4 sm:$0xff]  }
 0x2f1   : > { %3420 = vrcp.f32 %v1163_v14  ;;  %v3419_v17 = vpop.eup %3418  ;;  %v1176_v22 = vadd.f32 1.0, %v3417_v16  ;;  %v3359_v14 = vld [vmem:[#allocation5 + $0x208] ss:$16 sps:$4 sm:$0xff]   ;;  %v3367_v16 = vld [vmem:[#allocation5 + $0x22c] ss:$16 sps:$4 sm:$0xff]  }
 0x2f2   : > { %3422 = vrcp.f32 %v1169_v15  ;;  %v3364_v15 = vld [vmem:[#allocation5 + $0x224] ss:$16 sps:$4 sm:$0xff]  }
 0x2f3   : > { %3424 = vrcp.f32 %v1176_v22  ;;  %v3371_v22 = vld [vmem:[#allocation5 + $0x248] ss:$16 sps:$4 sm:$0xff]  }
 0x2fb   : > { %v3421_v19 = vpop.eup %3420 }
 0x2fc   : > { %v3423_v20 = vpop.eup %3422  ;;  %v1180_v21 = vmul.f32 %v3421_v19, %v3419_v17  ;;  %v3362_v17 = vld [vmem:[#allocation5 + $0x220] ss:$16 sps:$4 sm:$0xff]   ;;  %v3370_v19 = vld [vmem:[#allocation5 + $0x244] ss:$16 sps:$4 sm:$0xff]  }
 0x2fd   : > { %v1179_v23 = vmul.f32 %v3423_v20, %v583_v18  ;;  %v3425_v25 = vpop.eup %3424  ;;  %v4102_v45 = vpop.f32.mrb[8].mxu1  ;;  %v3365_v18 = vld [vmem:[#allocation5 + $0x228] ss:$16 sps:$4 sm:$0xff]   ;;  %v3373_v20 = vld [vmem:[#allocation5 + $0x24c] ss:$16 sps:$4 sm:$0xff]  }
 0x2fe   : > { %v4104_v46 = vpop.f32.mrb[9].mxu1  ;;  %v4106_v54 = vpop.f32.mrb[12].mxu0 }
 0x2ff   : > { %v1181_v24 = vadd.f32 %v1180_v21, %v1179_v23  ;;  %v1456_v47 = vpop.f32.mrb[10].mxu1  ;;  %v4108_v55 = vpop.f32.mrb[13].mxu0  ;;  %v3368_v21 = vld [vmem:[#allocation5 + $0x240] ss:$16 sps:$4 sm:$0xff]   ;;  %v3376_v23 = vld [vmem:[#allocation5 + $0x264] ss:$16 sps:$4 sm:$0xff]  }
 0x300   : > { %v1457_v49 = vpop.f32.mrb[11].mxu1  ;;  %v1497_v56 = vpop.f32.mrb[14].mxu0 }
 0x301   : > { %1185 = vst [vmem:[#allocation14] sm:$0xff] %v1181_v24  ;;  %3426 = vtanh.f32 %v1181_v24  ;;  %v1498_v57 = vpop.f32.mrb[15].mxu0  ;;  %v3379_v24 = vld [vmem:[#allocation5 + $0x26c] ss:$16 sps:$4 sm:$0xff]  }
 0x30b   : > { %v3427_v26 = vpop.eup %3426 }
 0x30c   : > { %v1183_v29 = vmul.f32 %v3427_v26, %v3425_v25  ;;  %v3374_v25 = vld [vmem:[#allocation5 + $0x260] ss:$16 sps:$4 sm:$0xff]   ;;  %v3377_v26 = vld [vmem:[#allocation5 + $0x268] ss:$16 sps:$4 sm:$0xff]  }
 0x30e   : > { %v1190_v32 = vpack.c.bf16 %v1183_v29, %v1183_v29  ;;  %1184 = vst [vmem:[#allocation12] sm:$0xff] %v1183_v29  ;;  %v3385_v29 = vld [vmem:[#allocation5 + $0x28c] ss:$16 sps:$4 sm:$0xff]  }
 0x310   : > { %1693 = vmatmul.mubr.bf16.vlgmr.msra.gmra.mrb[12].mxu1 %v1190_v32  ;;  %1734 = vmatmul.mubr.bf16.vlgmr.msra.gmra.mrb[16].mxu0 %v1190_v32  ;;  %v3388_v32 = vld [vmem:[#allocation5 + $0x2a4] ss:$16 sps:$4 sm:$0xff]  }
 0x311   : > { %2028 = vmatpush1.bf16.msra.mxu1 %v3308_v30  ;;  %2069 = vmatpush1.bf16.msra.mxu0 %v3311_v31  ;;  %v3380_v30 = vld [vmem:[#allocation5 + $0x280] ss:$16 sps:$4 sm:$0xff]   ;;  %v3383_v31 = vld [vmem:[#allocation5 + $0x288] ss:$16 sps:$4 sm:$0xff]  }
 0x312   : > { %2029 = vmatprep.subr.bf16.mxu1 %v3316_v33  ;;  %2070 = vmatprep.subr.bf16.mxu0 %v3319_v34  ;;  %v3386_v33 = vld [vmem:[#allocation5 + $0x2a0] ss:$16 sps:$4 sm:$0xff]   ;;  %v3391_v34 = vld [vmem:[#allocation5 + $0x2ac] ss:$16 sps:$4 sm:$0xff]  }
 0x313   : > { %2059 = vmatprep.mubr.bf16.mxu1 %v3743_v8  ;;  %2100 = vmatprep.mubr.bf16.mxu0 %v3743_v8 }
 0x315   : > { %2030 = vmatpush1.bf16.msra.mxu1 %v3314_v35  ;;  %2071 = vmatpush1.bf16.msra.mxu0 %v3317_v36  ;;  %v3389_v35 = vld [vmem:[#allocation5 + $0x2a8] ss:$16 sps:$4 sm:$0xff]   ;;  %v3394_v36 = vld [vmem:[#allocation5 + $0x2c4] ss:$16 sps:$4 sm:$0xff]  }
 0x316   : > { %2031 = vmatprep.subr.bf16.mxu1 %v3322_v37  ;;  %2072 = vmatprep.subr.bf16.mxu0 %v3325_v38  ;;  %v3397_v37 = vld [vmem:[#allocation5 + $0x2cc] ss:$16 sps:$4 sm:$0xff]   ;;  %v3392_v38 = vld [vmem:[#allocation5 + $0x2c0] ss:$16 sps:$4 sm:$0xff]  }
 0x319   : > { %2032 = vmatpush1.bf16.msra.mxu1 %v3320_v39  ;;  %2073 = vmatpush1.bf16.msra.mxu0 %v3323_v40  ;;  %v3395_v39 = vld [vmem:[#allocation5 + $0x2c8] ss:$16 sps:$4 sm:$0xff]   ;;  %v3400_v40 = vld [vmem:[#allocation5 + $0x2e4] ss:$16 sps:$4 sm:$0xff]  }
 0x31a   : > { %2033 = vmatprep.subr.bf16.mxu1 %v3328_v41  ;;  %2074 = vmatprep.subr.bf16.mxu0 %v3331_v42  ;;  %v3403_v41 = vld [vmem:[#allocation5 + $0x2ec] ss:$16 sps:$4 sm:$0xff]   ;;  %v3398_v42 = vld [vmem:[#allocation5 + $0x2e0] ss:$16 sps:$4 sm:$0xff]  }
 0x31d   : > { %2034 = vmatpush1.bf16.msra.mxu1 %v3326_v43  ;;  %2075 = vmatpush1.bf16.msra.mxu0 %v3329_v44  ;;  %v3401_v43 = vld [vmem:[#allocation5 + $0x2e8] ss:$16 sps:$4 sm:$0xff]   ;;  %v1743_v44 = vld [vmem:[#allocation8 + $0x4] sm:$0xf] }
 0x31e   : > { %2035 = vmatprep.subr.bf16.mxu1 %v3334_v58  ;;  %2076 = vmatprep.subr.bf16.mxu0 %v3337_v60  ;;  %v1748_v47 = vrot.slane %v1743_v44, %v4084_v48  ;;  %v1752_v57 = vrot.slane %v1743_v44, %v4086_v53 }
 0x321   : > { %2036 = vmatpush1.bf16.msra.mxu1 %v3332_v59  ;;  %2077 = vmatpush1.bf16.msra.mxu0 %v3335_v61 }
 0x322   : > { %2037 = vmatprep.subr.bf16.mxu1 %v3340_v62  ;;  %2078 = vmatprep.subr.bf16.mxu0 %v3343_v0 }
 0x325   : > { %2038 = vmatpush1.bf16.msra.mxu1 %v3338_v52  ;;  %2079 = vmatpush1.bf16.msra.mxu0 %v3341_v1 }
 0x326   : > { %2039 = vmatprep.subr.bf16.mxu1 %v3346_v2  ;;  %2080 = vmatprep.subr.bf16.mxu0 %v3349_v4 }
 0x329   : > { %2040 = vmatpush1.bf16.msra.mxu1 %v3344_v3  ;;  %2081 = vmatpush1.bf16.msra.mxu0 %v3347_v5 }
 0x32a   : > { %2041 = vmatprep.subr.bf16.mxu1 %v3352_v6  ;;  %2082 = vmatprep.subr.bf16.mxu0 %v3355_v27  ;;  %v1760_v27 = vrot.slane %v1743_v44, %v4094_v63 }
 0x32d   : > { %2042 = vmatpush1.bf16.msra.mxu1 %v3350_v7  ;;  %2083 = vmatpush1.bf16.msra.mxu0 %v3353_v10 }
 0x32e   : > { %2269 = vmatprep.subr.bf16.mxu1 %v3358_v11  ;;  %2310 = vmatprep.subr.bf16.mxu0 %v3361_v12 }
 0x330   : > { %2060 = vmatmul.mubr.bf16.vlgmr.msra.gmra.mrb[16].mxu1 %v1833_v51  ;;  %2101 = vmatmul.mubr.bf16.vlgmr.msra.gmra.mrb[20].mxu0 %v1833_v51 }
 0x331   : > { %2301 = vmatprep.mubr.bf16.mxu1 %v3743_v8  ;;  %2270 = vmatpush1.bf16.msra.mxu1 %v3356_v13 }
 0x332   : > { %2311 = vmatpush1.bf16.msra.mxu0 %v3359_v14  ;;  %2342 = vmatprep.mubr.bf16.mxu0 %v3743_v8  ;;  %v3382_v8 = vld [vmem:[#allocation5 + $0x284] ss:$16 sps:$4 sm:$0xff]   ;;  %v1189_v14 = vld [vmem:[#allocation14 + $0x8] sm:$0xff] }
 0x333   : > { %2271 = vmatprep.subr.bf16.mxu1 %v3364_v15  ;;  %2312 = vmatprep.subr.bf16.mxu0 %v3367_v16 }
 0x335   : > { %2272 = vmatpush1.bf16.msra.mxu1 %v3362_v17 }
 0x336   : > { %2313 = vmatpush1.bf16.msra.mxu0 %v3365_v18  ;;  %2273 = vmatprep.subr.bf16.mxu1 %v3370_v19 }
 0x337   : > { %2314 = vmatprep.subr.bf16.mxu0 %v3373_v20 }
 0x339   : > { %2274 = vmatpush1.bf16.msra.mxu1 %v3368_v21 }
 0x33a   : > { %2315 = vmatpush1.bf16.msra.mxu0 %v3371_v22  ;;  %2275 = vmatprep.subr.bf16.mxu1 %v3376_v23 }
 0x33b   : > { %2316 = vmatprep.subr.bf16.mxu0 %v3379_v24 }
 0x33d   : > { %2276 = vmatpush1.bf16.msra.mxu1 %v3374_v25 }
 0x33e   : > { %2317 = vmatpush1.bf16.msra.mxu0 %v3377_v26  ;;  %2277 = vmatprep.subr.bf16.mxu1 %v3382_v8 }
 0x33f   : > { %2318 = vmatprep.subr.bf16.mxu0 %v3385_v29 }
 0x341   : > { %2278 = vmatpush1.bf16.msra.mxu1 %v3380_v30 }
 0x342   : > { %2319 = vmatpush1.bf16.msra.mxu0 %v3383_v31  ;;  %2279 = vmatprep.subr.bf16.mxu1 %v3388_v32 }
 0x343   : > { %2320 = vmatprep.subr.bf16.mxu0 %v3391_v34  ;;  %v3404_v34 = vld [vmem:[#allocation10] sm:$0xff]  }
 0x345   : > { %2280 = vmatpush1.bf16.msra.mxu1 %v3386_v33 }
 0x346   : > { %2321 = vmatpush1.bf16.msra.mxu0 %v3389_v35  ;;  %2281 = vmatprep.subr.bf16.mxu1 %v3394_v36  ;;  %v3405_v35 = vld [vmem:[#allocation10 + $0x8] sm:$0xff]   ;;  %v3406_v36 = vld [vmem:[#allocation10 + $0x10] sm:$0xff]  }
 0x347   : > { %2322 = vmatprep.subr.bf16.mxu0 %v3397_v37  ;;  %v3407_v37 = vld [vmem:[#allocation10 + $0x18] sm:$0xff]  }
 0x349   : > { %2282 = vmatpush1.bf16.msra.mxu1 %v3392_v38  ;;  %v3408_v38 = vld [vmem:[#allocation10 + $0x20] sm:$0xff]  }
 0x34a   : > { %2323 = vmatpush1.bf16.msra.mxu0 %v3395_v39  ;;  %2283 = vmatprep.subr.bf16.mxu1 %v3400_v40  ;;  %v3409_v39 = vld [vmem:[#allocation10 + $0x28] sm:$0xff]   ;;  %v3410_v40 = vld [vmem:[#allocation10 + $0x30] sm:$0xff]  }
 0x34b   : > { %2324 = vmatprep.subr.bf16.mxu0 %v3403_v41  ;;  %v3411_v41 = vld [vmem:[#allocation10 + $0x38] sm:$0xff]  }
 0x34d   : > { %2284 = vmatpush1.bf16.msra.mxu1 %v3398_v42  ;;  %v2352_v42 = vld [vmem:[#allocation8 + $0x8] sm:$0xf] }
 0x34e   : > { %2325 = vmatpush1.bf16.msra.mxu0 %v3401_v43  ;;  %2971 = vmatprep.subr.bf16.mxu1 %v3744_v9  ;;  %v2357_v43 = vrot.slane %v2352_v42, %v4084_v48  ;;  %v2369_v48 = vrot.slane %v2352_v42, %v4094_v63 }
 0x3e3   : > { %v1694_v49 = vpop.f32.mrb[12].mxu1  ;;  %v1735_v56 = vpop.f32.mrb[16].mxu0 }
 0x3e4   : > { %v1695_v58 = vadd.f32 %v1694_v49, %v4102_v45  ;;  %v1736_v59 = vadd.f32 %v1735_v56, %v4106_v54  ;;  %v1696_v60 = vpop.f32.mrb[13].mxu1  ;;  %v1737_v61 = vpop.f32.mrb[17].mxu0  ;;  %v1756_v54 = vrot.slane %v1743_v44, %v4097_v50  ;;  %v2361_v49 = vrot.slane %v2352_v42, %v4086_v53 }
 0x3e5   : > { %v1697_v62 = vadd.f32 %v1696_v60, %v4104_v46  ;;  %v1738_v52 = vadd.f32 %v1737_v61, %v4108_v55  ;;  %v1698_v0 = vpop.f32.mrb[14].mxu1  ;;  %v1739_v1 = vpop.f32.mrb[18].mxu0  ;;  %v2365_v53 = vrot.slane %v2352_v42, %v4097_v50 }
 0x3e6   : > { %v1765_v2 = vadd.f32 %v1748_v47, %v1695_v58  ;;  %v1699_v3 = vpop.f32.mrb[15].mxu1  ;;  %v1740_v4 = vpop.f32.mrb[19].mxu0  ;;  %v1767_v28 = vadd.f32 %v1756_v54, %v1736_v59 }
 0x3e7   : > { %v1766_v5 = vadd.f32 %v1752_v57, %v1697_v62  ;;  %v1768_v45 = vadd.f32 %v1760_v27, %v1738_v52 }
 0x3e8   : > { %v2846_v6 = vmul.f32 -1.442695, %v1765_v2 }
 0x3e9   : > { %v2847_v7 = vmul.f32 -1.442695, %v1766_v5  ;;  %v2848_v10 = vmul.f32 -1.442695, %v1768_v45 }
 0x3ea   : > { %3428 = vpow2.f32 %v2846_v6 }
 0x3eb   : > { %3430 = vpow2.f32 %v2847_v7 }
 0x3ec   : > { %3432 = vpow2.f32 %v2848_v10 }
 0x3ed   : > { %3434 = vtanh.f32 %v1767_v28 }
 0x3f4   : > { %v3429_v46 = vpop.eup %3428 }
 0x3f5   : > { %v3431_v51 = vpop.eup %3430  ;;  %v1772_v55 = vadd.f32 1.0, %v3429_v46 }
 0x3f6   : > { %v1778_v11 = vadd.f32 1.0, %v3431_v51  ;;  %v3433_v12 = vpop.eup %3432  ;;  %v1798_v51 = vld [vmem:[#allocation14 + $0x10] sm:$0xff] }
 0x3f7   : > { %3436 = vrcp.f32 %v1772_v55  ;;  %v3435_v13 = vpop.eup %3434  ;;  %v1785_v18 = vadd.f32 1.0, %v3433_v12 }
 0x3f8   : > { %3438 = vrcp.f32 %v1778_v11 }
 0x3f9   : > { %3440 = vrcp.f32 %v1785_v18 }
 0x401   : > { %v3437_v15 = vpop.eup %3436 }
 0x402   : > { %v3439_v16 = vpop.eup %3438  ;;  %v1789_v17 = vmul.f32 %v3437_v15, %v3435_v13 }
 0x403   : > { %v1788_v19 = vmul.f32 %v3439_v16, %v1189_v14  ;;  %v3441_v21 = vpop.eup %3440  ;;  %v2061_v25 = vpop.f32.mrb[16].mxu1 }
 0x404   : > { %v2063_v26 = vpop.f32.mrb[17].mxu1  ;;  %v2102_v30 = vpop.f32.mrb[20].mxu0 }
 0x405   : > { %v1790_v20 = vadd.f32 %v1789_v17, %v1788_v19  ;;  %v2065_v8 = vpop.f32.mrb[18].mxu1  ;;  %v2104_v31 = vpop.f32.mrb[21].mxu0 }
 0x406   : > { %v2066_v29 = vpop.f32.mrb[19].mxu1  ;;  %v2106_v32 = vpop.f32.mrb[22].mxu0 }
 0x407   : > { %1794 = vst [vmem:[#allocation14 + $0x8] sm:$0xff] %v1790_v20  ;;  %3442 = vtanh.f32 %v1790_v20  ;;  %v2107_v33 = vpop.f32.mrb[23].mxu0 }
 0x411   : > { %v3443_v22 = vpop.eup %3442 }
 0x412   : > { %v1792_v23 = vmul.f32 %v3443_v22, %v3441_v21 }
 0x414   : > { %v1799_v24 = vpack.c.bf16 %v1792_v23, %v1792_v23  ;;  %1793 = vst [vmem:[#allocation12 + $0x8] sm:$0xff] %v1792_v23 }
 0x416   : > { %2302 = vmatmul.mubr.bf16.vlgmr.msra.gmra.mrb[20].mxu1 %v1799_v24  ;;  %2343 = vmatmul.mubr.bf16.vlgmr.msra.gmra.mrb[24].mxu0 %v1799_v24 }
 0x417   : > { %2987 = vmatprep.mubr.msk.bf16.mxu1 %vm3745_vm0, %v3744_v9  ;;  %2972 = vmatpush3.bf16.msra.mxu1 %v3404_v34 }
 0x418   : > { %2973 = vmatprep.subr.bf16.mxu1 %v3744_v9 }
 0x41b   : > { %2974 = vmatpush3.bf16.msra.mxu1 %v3405_v35 }
 0x41c   : > { %2975 = vmatprep.subr.bf16.mxu1 %v3744_v9 }
 0x41f   : > { %2976 = vmatpush3.bf16.msra.mxu1 %v3406_v36 }
 0x420   : > { %2977 = vmatprep.subr.bf16.mxu1 %v3744_v9 }
 0x423   : > { %2978 = vmatpush3.bf16.msra.mxu1 %v3407_v37 }
 0x424   : > { %2979 = vmatprep.subr.bf16.mxu1 %v3744_v9 }
 0x427   : > { %2980 = vmatpush3.bf16.msra.mxu1 %v3408_v38 }
 0x428   : > { %2981 = vmatprep.subr.bf16.mxu1 %v3744_v9 }
 0x42b   : > { %2982 = vmatpush3.bf16.msra.mxu1 %v3409_v39 }
 0x42c   : > { %2983 = vmatprep.subr.bf16.mxu1 %v3744_v9 }
 0x42f   : > { %2984 = vmatpush3.bf16.msra.mxu1 %v3410_v40 }
 0x430   : > { %2985 = vmatprep.subr.bf16.mxu1 %v3744_v9 }
 0x433   : > { %2986 = vmatpush3.bf16.msra.mxu1 %v3411_v41 }
 0x4e9   : > { %v2303_v44 = vpop.f32.mrb[20].mxu1  ;;  %v2344_v47 = vpop.f32.mrb[24].mxu0 }
 0x4ea   : > { %v2304_v56 = vadd.f32 %v2303_v44, %v2061_v25  ;;  %v2345_v57 = vadd.f32 %v2344_v47, %v2102_v30  ;;  %v2305_v58 = vpop.f32.mrb[21].mxu1  ;;  %v2346_v59 = vpop.f32.mrb[25].mxu0 }
 0x4eb   : > { %v2306_v60 = vadd.f32 %v2305_v58, %v2063_v26  ;;  %v2347_v61 = vadd.f32 %v2346_v59, %v2104_v31  ;;  %v2307_v62 = vpop.f32.mrb[22].mxu1  ;;  %v2348_v52 = vpop.f32.mrb[26].mxu0 }
 0x4ec   : > { %v2374_v0 = vadd.f32 %v2357_v43, %v2304_v56  ;;  %v2308_v1 = vpop.f32.mrb[23].mxu1  ;;  %v2349_v2 = vpop.f32.mrb[27].mxu0  ;;  %v2376_v7 = vadd.f32 %v2365_v53, %v2345_v57 }
 0x4ed   : > { %v2375_v9 = vadd.f32 %v2361_v49, %v2306_v60  ;;  %v2377_v5 = vadd.f32 %v2369_v48, %v2347_v61 }
 0x4ee   : > { %v2913_v3 = vmul.f32 -1.442695, %v2374_v0 }
 0x4ef   : > { %v2914_v4 = vmul.f32 -1.442695, %v2375_v9  ;;  %v2915_v6 = vmul.f32 -1.442695, %v2377_v5 }
 0x4f0   : > { %3444 = vpow2.f32 %v2913_v3 }
 0x4f1   : > { %3446 = vpow2.f32 %v2914_v4 }
 0x4f2   : > { %3448 = vpow2.f32 %v2915_v6 }
 0x4f3   : > { %3450 = vtanh.f32 %v2376_v7 }
 0x4fa   : > { %v3445_v27 = vpop.eup %3444 }
 0x4fb   : > { %v3447_v45 = vpop.eup %3446  ;;  %v2381_v54 = vadd.f32 1.0, %v3445_v27 }
 0x4fc   : > { %v2387_v10 = vadd.f32 1.0, %v3447_v45  ;;  %v3449_v28 = vpop.eup %3448 }
 0x4fd   : > { %3452 = vrcp.f32 %v2381_v54  ;;  %v3451_v46 = vpop.eup %3450  ;;  %v2394_v12 = vadd.f32 1.0, %v3449_v28 }
 0x4fe   : > { %3454 = vrcp.f32 %v2387_v10 }
 0x4ff   : > { %3456 = vrcp.f32 %v2394_v12 }
 0x507   : > { %v3453_v55 = vpop.eup %3452 }
 0x508   : > { %v3455_v63 = vpop.eup %3454  ;;  %v2398_v11 = vmul.f32 %v3453_v55, %v3451_v46 }
 0x509   : > { %v2397_v13 = vmul.f32 %v3455_v63, %v1798_v51  ;;  %v3457_v14 = vpop.eup %3456 }
 0x50b   : > { %v2399_v50 = vadd.f32 %v2398_v11, %v2397_v13 }
 0x50d   : > { %2403 = vst [vmem:[#allocation14 + $0x10] sm:$0xff] %v2399_v50  ;;  %3458 = vtanh.f32 %v2399_v50 }
 0x517   : > { %v3459_v15 = vpop.eup %3458 }
 0x518   : > { %v2401_v16 = vmul.f32 %v3459_v15, %v3457_v14 }
 0x51a   : > { %v2404_v17 = vpack.c.bf16 %v2401_v16, %v2401_v16  ;;  %2402 = vst [vmem:[#allocation12 + $0x10] sm:$0xff] %v2401_v16 }
 0x51c   : > { %2988 = vmatmul.mubr.bf16.vlgmr.msra.gmra.mrb[24].mxu1 %v2404_v17 }
 0x51d   : > { %3613 = shalt.err (!%p3610_p5)
}
 0x51e   : > { %s3614_s30 = scalar_lea.hbm %s4239_s10, 384  ;;  %p4285_p9 = pmov %p4284_p4 }
 0x51f   : > { %p3615_p6 = scmp.ne.s32.totalorder %s4239_s10, %s3614_s30  ;;  %p3620_p11 = scmp.lt.u32.totalorder %s3614_s30, %s4239_s10 }
 0x521   : > { %p3616_p10 = pnand %p3615_p6, %p4285_p9 }
 0x523   : > { %p3617_p13 = pneg %p3616_p10 }
 0x525   : > { %p3622_p0 = pnand %p3620_p11, %p3617_p13 }
 0x527   : > { %3625 = shalt.err (!%p3622_p0)
}
 0x528   : > { %s3748_s20 = smov 128   ;;  %s3749_s4 = smov 8  }
 0x529   : > { %p4286_p3 = pmov %p4284_p4  ;;  %s3750_s25 = smov [#allocation14]  }
 0x52a   : > { %s2554_s16 = sshll.u32 %s3750_s25, 4  ;;  %s2555_s16 = int_to_ptr.vmem [resolvable:$true] %s2554_s16 }
 0x52b   : > { %3013 = dma.vmem_to_hbm [thread:$0]  (%p4286_p3), %s2542_s19, 384, %s4239_s10, [#allocation13], %s3748_s20, %s3748_s20, %s3749_s4  }
 0x52c   : > { %s3626_s12 = scalar_lea.vmem %s2555_s16, 384  ;;  %p4287_p7 = pmov %p4286_p3 }
 0x52d   : > { %p3627_p4 = scmp.ne.s32.totalorder %s2555_s16, %s3626_s12  ;;  %p3633_p2 = scmp.lt.s32.totalorder %s2555_s16, %s2555_s16 }
 0x52e   : > { %p3634_p1 = scmp.lt.s32.totalorder %s3626_s12, %s3626_s12 }
 0x52f   : > { %p3628_p8 = pnand %p3627_p4, %p4287_p7 }
 0x530   : > { %p3635_p5 = por %p3634_p1, %p3633_p2 }
 0x531   : > { %p3629_p12 = pneg %p3628_p8 }
 0x533   : > { %p3636_p6 = pnand %p3635_p5, %p3629_p12 }
 0x535   : > { %3639 = shalt.err (!%p3636_p6)
}
 0x536   : > { %s3640_s28 = scalar_lea.hbm %s4240_s11, 384  ;;  %p4288_p10 = pmov %p4286_p3 }
 0x537   : > { %p3641_p9 = scmp.ne.s32.totalorder %s4240_s11, %s3640_s28  ;;  %p3646_p0 = scmp.lt.u32.totalorder %s3640_s28, %s4240_s11 }
 0x539   : > { %p3642_p13 = pnand %p3641_p9, %p4288_p10 }
 0x53b   : > { %p3643_p11 = pneg %p3642_p13 }
 0x53d   : > { %p3648_p3 = pnand %p3646_p0, %p3643_p11 }
 0x53f   : > { %3651 = shalt.err (!%p3648_p3)
}
 0x540   : > { %p4289_p4 = pmov %p4287_p7  ;;  %v2916_v18 = vld [vmem:[%s4237_s8] ss:$0 sm:$0xff]  ;;  %s2926_s25 = sshll.u32 %s3833_s21, 7 }
 0x541   : > { %s2531_s12 = sshll.u32 %s442_s26, 4  ;;  %s4290_s28 = sld [smem:[#allocation28_spill]]  ;;  %s4181_s12 = int_to_ptr.vmem [resolvable:$true] %s2531_s12 }
 0x542   : > { %3015 = dma.vmem_to_hbm [thread:$0]  (%p4289_p4), %s2555_s16, 384, %s4240_s11, [#allocation13], %s3748_s20, %s3748_s20, %s3749_s4  }
 0x543   : > { %s2518_s20 = scalar_lea.sflag [#allocation4], %s440_s29  ;;  %s3652_s4 = scalar_lea.vmem %s4181_s12, 128 }
 0x544   : > { %p3653_p7 = scmp.ne.s32.totalorder %s4181_s12, %s3652_s4  ;;  %p4291_p8 = scmp.ne.s32.totalorder %s4264_s27, 0 }
 0x545   : > { %s3751_s16 = smov [#allocation11]  }
 0x546   : > { %p3654_p12 = pnand %p3653_p7, %p4291_p8  ;;  %s3656_s19 = sshll.u32 %s3751_s16, 4  ;;  %s3657_s19 = int_to_ptr.vmem [resolvable:$false] %s3656_s19 }
 0x547   : > { %s4179_s30 = scalar_lea.hbm %s4290_s28, %s2926_s25  ;;  %s3658_s14 = scalar_lea.vmem %s3657_s19, 256 }
 0x548   : > { %p3655_p2 = pneg %p3654_p12  ;;  %p3659_p1 = scmp.lt.s32.totalorder %s4181_s12, %s3657_s19 }
 0x549   : > { %p3660_p5 = scmp.lt.s32.totalorder %s3658_s14, %s3652_s4 }
 0x54b   : > { %p3661_p6 = por %p3660_p5, %p3659_p1 }
 0x54d   : > { %p3662_p9 = pnand %p3661_p6, %p3655_p2 }
 0x5ef   : > { %v2510_v19 = vpop.f32.mrb[24].mxu1 }
 0x5f0   : > { %v2511_v20 = vadd.f32 %v2916_v18, %v2510_v19  ;;  %v2989_v21 = vpop.f32.mrb[25].mxu1 }
 0x5f1   : > { %v2513_v22 = vpop.f32.mrb[26].mxu1 }
 0x5f2   : > { %2516 = vst [vmem:[%s442_s26] sm:$0xff] %v2511_v20  ;;  %v2990_v23 = vpop.f32.mrb[27].mxu1 }
 0x5f3   : > { %3665 = shalt.err (!%p3662_p9)
}
 0x5f4   : > { %s3666_s29 = scalar_lea.hbm %s4179_s30, 128  ;;  %s3670_s17 = scalar_lea.hbm %s4290_s28, 1024 }
 0x5f5   : > { %p3667_p10 = scmp.ne.s32.totalorder %s4179_s30, %s3666_s29  ;;  %p3671_p0 = scmp.lt.u32.totalorder %s4179_s30, %s4290_s28 }
 0x5f6   : > { %p3672_p3 = scmp.lt.u32.totalorder %s3670_s17, %s3666_s29  ;;  %p3674_p7 = scmp.lt.u32.totalorder %s3666_s29, %s4179_s30 }
 0x5f7   : > { %p3668_p13 = pnand %p3667_p10, %p4291_p8 }
 0x5f8   : > { %p3673_p4 = por %p3672_p3, %p3671_p0 }
 0x5f9   : > { %p3669_p11 = pneg %p3668_p13 }
 0x5fa   : > { %p3675_p12 = por %p3674_p7, %p3673_p4 }
 0x5fc   : > { %p3676_p2 = pnand %p3675_p12, %p3669_p11 }
 0x5fe   : > { %3679 = shalt.err (!%p3676_p2)
}
 0x5ff   : > { %3011 = dma.vmem_to_hbm [thread:$0]  (%p4291_p8), %s4181_s12, 128, %s4179_s30, %s2518_s20  }
 0x600   : > { %p4292_p1 = scmp.eq.s32.totalorder %s3833_s21, 7 }
 0x602   : > { %3709 = dma.done.wait (%p4292_p1), [#allocation13], 768   ;;  %p4293_p5 = pmov %p4292_p1 }
 0x604   : > { %3711 = vsyncadd (%p4293_p5), [#allocation13], 4294966528 }
 0x605 PF: > { %s4294_s22 = sld [smem:[#allocation22_spill]]  ;;  %s4295_s23 = sld [smem:[#allocation20_spill]] }
 0x606   : > { %s4296_s25 = sld [smem:[#allocation25_spill]] }
 0x60b   : > { %p3055_p6 = scmp.ge.s32.totalorder %s4294_s22, 2  ;;  %s2577_s15 = sand.u32 1, %s4295_s23  }
 0x60c   : > { %p4297_p9 = scmp.ne.s32.totalorder %s4296_s25, 0  ;;  %s2578_s24 = scalar_lea.sflag [#allocation4], %s2577_s15 }
 0x60e   : > { %p3038_p10 = pnand %p3055_p6, %p4297_p9 }
 0x610   : > { %3713 = dma.done.wait (!%p3038_p10), %s2578_s24, 128  }
 0x611   : > { %3715 = vsyncadd (!%p3038_p10), %s2578_s24, 4294967168  ;;  %s4298_s20 = sld [smem:[#allocation23_spill]]  ;;  %s4299_s27 = sld [smem:[#allocation21_spill]] }
 0x612   : > { %s4300_s19 = sld [smem:[#allocation24_spill]]  ;;  %s4301_s17 = smov %s3722_s18 }
 0x617   : > { %p26_p8 = scmp.ge.s32.totalorder %s4298_s20, 10   ;;  %s4302_s18 = smov %s4299_s27 }
 0x619   :  { %28 = sbr.rel (!%p26_p8) target bundleno = 11 (0xb), region = 142 }
 0x620   :  { %2583 = vsyncpa [#allocation3], 1 }
 0x621   :  { %2585 = vsyncpa [#allocation3 + $0x1], 1 }
 0x622   :  { %2586 = vsyncpa [#allocation6], 1 }
 0x623   :  { %2587 = vsyncpa [#allocation9], 1 }
 0x624   :  { %2588 = vsyncpa [#allocation4], 1 }
 0x625   :  { %2590 = vsyncpa [#allocation4 + $0x1], 1 }
 0x626   :  { %2591 = vsyncpa [#allocation13], 1 }

</bundles_post_ra>
